<compile_context>
chip_gen: v6e
topology: v6e:2x2x1
jax: 0.10.0
libtpu: 0.0.40
codegen_flags: <defaults>
</compile_context>

<pallas_src>
import math
from functools import partial

import jax
import jax.numpy as jnp
from jax import lax
from jax.experimental import pallas as pl
from jax.experimental.pallas import tpu as pltpu


# ----------------------------------------------------------------------------
# Pallas kernel: one batch-block of flattened images through the whole network.
# ----------------------------------------------------------------------------
def _autoencoder2d_kernel(x_ref,      # VMEM (BBLK, n*n)  f32   input images (flat)
                          cmat_ref,   # VMEM (n*n, n*n)   bf16  conv3x3 operator
                          bconv_ref,  # VMEM (1, n*n)     f32   conv bias
                          pumat_ref,  # VMEM (n*n, n*n)   bf16  pool->lin1->up->lin2
                          bup_ref,    # VMEM (1, n*n)     f32   fused bias
                          lmat_ref,   # VMEM (n*n, n*n)   bf16  linear3 operator
                          b3_ref,     # VMEM (1, n*n)     f32   linear3 bias
                          o_ref):     # VMEM (BBLK, n*n)  f32   sigmoid output
    # conv1 (3x3, 'same', 1->1 channel) + bias, ReLU
    y = jnp.dot(x_ref[...].astype(jnp.bfloat16), cmat_ref[...],
                preferred_element_type=jnp.float32)
    y = jnp.maximum(y + bconv_ref[...], 0.0)

    # avg-pool -> (ReLU == identity on the non-negative pool output)
    # -> linear1 -> bilinear upsample x2 (align_corners=True) -> linear2, ReLU
    r = jnp.dot(y.astype(jnp.bfloat16), pumat_ref[...],
                preferred_element_type=jnp.float32)
    r = jnp.maximum(r + bup_ref[...], 0.0)

    # linear3 + numerically stable sigmoid (divide on the EUP)
    s = jnp.dot(r.astype(jnp.bfloat16), lmat_ref[...],
                preferred_element_type=jnp.float32) + b3_ref[...]
    e = jnp.exp(-jnp.abs(s))
    inv = pl.reciprocal(1.0 + e, approx=True)
    o_ref[...] = jnp.where(s >= 0.0, inv, e * inv)


# ----------------------------------------------------------------------------
# Wrapper-side operator construction (plain JAX, f32; cast to bf16 at the end).
# ----------------------------------------------------------------------------
def _avg_pool_matrix(n: int) -> jnp.ndarray:
    """(n/2, n) matrix P so that P @ X @ P^T is 2x2 average pooling."""
    nh = n // 2
    r = jnp.arange(nh)
    P = jnp.zeros((nh, n), jnp.float32)
    P = P.at[r, 2 * r].set(0.5)
    P = P.at[r, 2 * r + 1].set(0.5)
    return P


def _bilinear_matrix(out_size: int, in_size: int) -> jnp.ndarray:
    """(out, in) 1D linear-interp matrix, align_corners=True (separable bilinear)."""
    i = jnp.arange(out_size, dtype=jnp.float32)
    src = i * (in_size - 1) / (out_size - 1)
    lo = jnp.clip(jnp.floor(src).astype(jnp.int32), 0, in_size - 2)
    frac = src - lo.astype(jnp.float32)
    U = jnp.zeros((out_size, in_size), jnp.float32)
    U = U.at[jnp.arange(out_size), lo].add(1.0 - frac)
    U = U.at[jnp.arange(out_size), lo + 1].add(frac)
    return U


def _shift_matrix(n: int, d: int) -> jnp.ndarray:
    """(n, n) matrix A_d with (A_d X)[i, j] = X[i+d, j] (zero outside)."""
    i = jnp.arange(n)
    k = i + d
    valid = (k >= 0) & (k < n)
    S = jnp.zeros((n, n), jnp.float32)
    S = S.at[i, jnp.clip(k, 0, n - 1)].set(jnp.where(valid, 1.0, 0.0))
    return S


def build_operators(params, n: int):
    """Fuse the affine segments into flat (row-major-vec) operator matrices.

    Returned operators only depend on the parameters -- build once, reuse.
    """
    nh = n // 2
    nsq = n * n

    # conv3x3 'same':  Y = sum_ab w[a,b] * A_{a-1} X A_{b-1}^T
    #   -> vec_r(Y) = vec_r(X) @ sum_ab w[a,b] * kron(A_{a-1}^T, A_{b-1}^T)
    w = params["conv_w"]
    C = jnp.zeros((nsq, nsq), jnp.float32)
    for a in range(3):
        Sa = _shift_matrix(n, a - 1).T
        for b in range(3):
            Sb = _shift_matrix(n, b - 1).T
            C = C + w[a, b] * jnp.kron(Sa, Sb)
    b_conv = jnp.full((1, nsq), params["conv_b"][0], jnp.float32)

    # 2x2 average pool:  P X P^T  ->  kron(P^T, P^T)         (nsq, nh*nh)
    P = _avg_pool_matrix(n)
    M_pool = jnp.kron(P.T, P.T)

    # linear1 -> upsample -> linear2 (all affine, fused):
    #   U (X W1^T + 1 b1) U^T W2^T + 1 b2  =  U X R + 1 b', R = W1^T U^T W2^T
    U = _bilinear_matrix(n, nh)                                  # (n, nh)
    R = params["w1"].T @ U.T @ params["w2"].T                    # (nh, n)
    M_up = jnp.kron(U.T, R)                                      # (nh*nh, nsq)
    bias_img = (U @ (jnp.ones((nh, 1), jnp.float32) * params["b1"][None, :])
                @ U.T @ params["w2"].T + params["b2"][None, :])  # (n, n)
    b_up = bias_img.reshape(1, nsq)

    # Fuse pool into the lin1->up->lin2 operator (ReLU after pool is identity
    # on the non-negative pool output of a ReLU'd image):  (nsq, nsq)
    M_pu = M_pool @ M_up

    # linear3 on the last dim:  X W3^T  ->  kron(I_n, W3^T)
    M_l3 = jnp.kron(jnp.eye(n, dtype=jnp.float32), params["w3"].T)  # (nsq, nsq)
    b_l3 = jnp.tile(params["b3"], n).reshape(1, nsq)

    bf = jnp.bfloat16
    return (C.astype(bf), b_conv, M_pu.astype(bf), b_up, M_l3.astype(bf), b_l3)


def _round_up(x: int, m: int) -> int:
    return ((x + m - 1) // m) * m


def init_params(key, n: int):
    """Deterministic synthetic parameters (PyTorch-default-style uniform init)."""
    nh = n // 2
    ks = jax.random.split(key, 8)

    def unif(k, shape, fan_in):
        bound = 1.0 / math.sqrt(fan_in)
        return jax.random.uniform(k, shape, jnp.float32, -bound, bound)

    return dict(
        conv_w=unif(ks[0], (3, 3), 9),      # nn.Conv2d(1, 1, 3).weight -> (1,1,3,3)
        conv_b=unif(ks[1], (1,), 9),
        w1=unif(ks[2], (nh, nh), nh), b1=unif(ks[3], (nh,), nh),   # Linear(n/2, n/2)
        w2=unif(ks[4], (n, n), n),   b2=unif(ks[5], (n,), n),      # Linear(n, n)
        w3=unif(ks[6], (n, n), n),   b3=unif(ks[7], (n,), n),      # Linear(n, n)
    )


@partial(jax.jit, static_argnames=("bblk",))
def autoencoder2d_apply(x: jnp.ndarray, ops, *, bblk: int = 128) -> jnp.ndarray:
    """x: (B, N, N) float32 -> sigmoid output, squeezed like torch.squeeze()."""
    C, b_conv, M_pu, b_up, M_l3, b_l3 = ops
    B, n, n2 = x.shape
    assert n == n2 and n % 2 == 0
    nsq = n * n

    # Batch-blocked, lane-dense layout: (Bp, n*n) slabs, BBLK images per grid step.
    bblk = min(bblk, _round_up(B, 8))
    Bp = _round_up(B, bblk)
    xf = x.reshape(B, nsq).astype(jnp.float32)
    if Bp != B:
        xf = jnp.concatenate([xf, jnp.zeros((Bp - B, nsq), jnp.float32)], axis=0)
    nsteps = Bp // bblk

    flops = 2 * Bp * 3 * nsq * nsq
    bytes_accessed = (
        2 * Bp * nsq * 4                                        # x in + out (f32)
        + (C.size + M_pu.size + M_l3.size) * 2                  # bf16 operators
        + (b_conv.size + b_up.size + b_l3.size) * 4)            # f32 biases

    out = pl.pallas_call(
        _autoencoder2d_kernel,
        out_shape=jax.ShapeDtypeStruct((Bp, nsq), jnp.float32),
        grid=(nsteps,),
        in_specs=[
            pl.BlockSpec((bblk, nsq), lambda i: (i, 0)),   # x slab
            pl.BlockSpec((nsq, nsq), lambda i: (0, 0)),    # conv operator
            pl.BlockSpec((1, nsq), lambda i: (0, 0)),      # conv bias
            pl.BlockSpec((nsq, nsq), lambda i: (0, 0)),    # fused pool->lin1->up->lin2
            pl.BlockSpec((1, nsq), lambda i: (0, 0)),      # fused bias
            pl.BlockSpec((nsq, nsq), lambda i: (0, 0)),    # linear3 operator
            pl.BlockSpec((1, nsq), lambda i: (0, 0)),      # linear3 bias
        ],
        out_specs=pl.BlockSpec((bblk, nsq), lambda i: (i, 0)),
        compiler_params=pltpu.CompilerParams(
            dimension_semantics=("parallel",)),
        cost_estimate=pl.CostEstimate(
            flops=flops, transcendentals=Bp * nsq,
            bytes_accessed=bytes_accessed),
    )(xf, C, b_conv, M_pu, b_up, M_l3, b_l3)

    out = out[:B].reshape(B, n, n)
    # torch.squeeze() at the end of forward.
    return jnp.squeeze(out)


def autoencoder2d_forward(x: jnp.ndarray, params, *, bblk: int = 128) -> jnp.ndarray:
    """Convenience wrapper: build operators (once per call) and apply the kernel."""
    ops = build_operators(params, x.shape[-1])
    return autoencoder2d_apply(x, ops, bblk=bblk)


# ----------------------------------------------------------------------------
# Pure-JAX reference of the PyTorch forward (f32, highest precision).
# ----------------------------------------------------------------------------
def autoencoder2d_reference(x: jnp.ndarray, params) -> jnp.ndarray:
    B, n, _ = x.shape
    nh = n // 2
    hp = jax.lax.Precision.HIGHEST
    w = params["conv_w"].reshape(1, 1, 3, 3)
    y = lax.conv_general_dilated(
        x[:, None], w, window_strides=(1, 1), padding="SAME",
        dimension_numbers=("NCHW", "OIHW", "NCHW"), precision=hp)
    y = jax.nn.relu(y[:, 0] + params["conv_b"][0])
    p = jax.nn.relu(y.reshape(B, nh, 2, nh, 2).mean(axis=(2, 4)))
    z = jnp.einsum("bij,kj->bik", p, params["w1"], precision=hp) + params["b1"]
    U = _bilinear_matrix(n, nh)
    up = jnp.einsum("ij,bjk,lk->bil", U, z, U, precision=hp)
    r = jax.nn.relu(jnp.einsum("bij,kj->bik", up, params["w2"], precision=hp)
                    + params["b2"])
    s = jnp.einsum("bij,kj->bik", r, params["w3"], precision=hp) + params["b3"]
    return jnp.squeeze(jax.nn.sigmoid(s))


if __name__ == "__main__":
    n = 16          # "n" of Autoencoder2D(n)
    B = 200         # batch size (not a multiple of the batch block -> tests padding)
    key = jax.random.PRNGKey(0)
    kx, kp = jax.random.split(key)

    x = jax.random.normal(kx, (B, n, n), dtype=jnp.float32)
    params = init_params(kp, n)

    ops = build_operators(params, n)              # built once, reused across calls
    out = jax.block_until_ready(autoencoder2d_apply(x, ops, bblk=128))
    ref = jax.block_until_ready(autoencoder2d_reference(x, params))

    assert out.shape == (B, n, n), out.shape
    assert bool(jnp.all(jnp.isfinite(out)))
    # sigmoid range (tiny slack for the approx-reciprocal EUP divide)
    assert bool(jnp.all((out > -1e-3) & (out < 1.0 + 1e-3)))
    err = float(jnp.max(jnp.abs(out - ref)))
    assert err < 5e-2, f"max |kernel - reference| = {err}"
    print("KERNEL_OK")
</pallas_src>

<mosaic_0001>
module attributes {stable_mosaic.version = 11 : i64} {
  func.func @_autoencoder2d_kernel(%arg0: i32, %arg1: memref<128x256xf32, #tpu.memory_space<vmem>>, %arg2: memref<256x256xbf16, #tpu.memory_space<vmem>>, %arg3: memref<1x256xf32, #tpu.memory_space<vmem>>, %arg4: memref<256x256xbf16, #tpu.memory_space<vmem>>, %arg5: memref<1x256xf32, #tpu.memory_space<vmem>>, %arg6: memref<256x256xbf16, #tpu.memory_space<vmem>>, %arg7: memref<1x256xf32, #tpu.memory_space<vmem>>, %arg8: memref<128x256xf32, #tpu.memory_space<vmem>>) attributes {dimension_semantics = [#tpu.dimension_semantics<parallel>], iteration_bounds = array<i64: 2>, scalar_prefetch = 0 : i64, scratch_operands = 0 : i64, tpu.core_type = #tpu.core_type<tc>, window_params = [{transform_indices = @transform_0, window_bounds = array<i64: 128, 256>}, {pipeline_mode = #tpu.pipeline_mode<synchronous>, transform_indices = @transform_1, window_bounds = array<i64: 256, 256>}, {pipeline_mode = #tpu.pipeline_mode<synchronous>, transform_indices = @transform_2, window_bounds = array<i64: 1, 256>}, {pipeline_mode = #tpu.pipeline_mode<synchronous>, transform_indices = @transform_3, window_bounds = array<i64: 256, 256>}, {pipeline_mode = #tpu.pipeline_mode<synchronous>, transform_indices = @transform_4, window_bounds = array<i64: 1, 256>}, {pipeline_mode = #tpu.pipeline_mode<synchronous>, transform_indices = @transform_5, window_bounds = array<i64: 256, 256>}, {pipeline_mode = #tpu.pipeline_mode<synchronous>, transform_indices = @transform_6, window_bounds = array<i64: 1, 256>}, {transform_indices = @transform_7, window_bounds = array<i64: 128, 256>}]} {
    %c0 = arith.constant 0 : index
    %c0_0 = arith.constant 0 : index
    %0 = vector.load %arg1[%c0, %c0_0] : memref<128x256xf32, #tpu.memory_space<vmem>>, vector<128x256xf32>
    %1 = arith.truncf %0 : vector<128x256xf32> to vector<128x256xbf16>
    %c0_1 = arith.constant 0 : index
    %c0_2 = arith.constant 0 : index
    %2 = vector.load %arg2[%c0_1, %c0_2] : memref<256x256xbf16, #tpu.memory_space<vmem>>, vector<256x256xbf16>
    %cst = arith.constant dense<0.000000e+00> : vector<128x256xf32>
    %3 = tpu.matmul %1, %2, %cst {dimension_numbers = #tpu.dot_dimension_numbers<[1], [0], [0], [1], [0, 0, 1, 1], [], []>} : vector<128x256xbf16>, vector<256x256xbf16>, vector<128x256xf32> -> vector<128x256xf32>
    %c0_3 = arith.constant 0 : index
    %c0_4 = arith.constant 0 : index
    %4 = vector.load %arg3[%c0_3, %c0_4] : memref<1x256xf32, #tpu.memory_space<vmem>>, vector<1x256xf32>
    %5 = vector.broadcast %4 : vector<1x256xf32> to vector<128x256xf32>
    %6 = arith.addf %3, %5 : vector<128x256xf32>
    %cst_5 = arith.constant 0.000000e+00 : f32
    %7 = vector.broadcast %cst_5 : f32 to vector<128x256xf32>
    %8 = arith.maximumf %6, %7 : vector<128x256xf32>
    %9 = arith.truncf %8 : vector<128x256xf32> to vector<128x256xbf16>
    %c0_6 = arith.constant 0 : index
    %c0_7 = arith.constant 0 : index
    %10 = vector.load %arg4[%c0_6, %c0_7] : memref<256x256xbf16, #tpu.memory_space<vmem>>, vector<256x256xbf16>
    %cst_8 = arith.constant dense<0.000000e+00> : vector<128x256xf32>
    %11 = tpu.matmul %9, %10, %cst_8 {dimension_numbers = #tpu.dot_dimension_numbers<[1], [0], [0], [1], [0, 0, 1, 1], [], []>} : vector<128x256xbf16>, vector<256x256xbf16>, vector<128x256xf32> -> vector<128x256xf32>
    %c0_9 = arith.constant 0 : index
    %c0_10 = arith.constant 0 : index
    %12 = vector.load %arg5[%c0_9, %c0_10] : memref<1x256xf32, #tpu.memory_space<vmem>>, vector<1x256xf32>
    %13 = vector.broadcast %12 : vector<1x256xf32> to vector<128x256xf32>
    %14 = arith.addf %11, %13 : vector<128x256xf32>
    %cst_11 = arith.constant 0.000000e+00 : f32
    %15 = vector.broadcast %cst_11 : f32 to vector<128x256xf32>
    %16 = arith.maximumf %14, %15 : vector<128x256xf32>
    %17 = arith.truncf %16 : vector<128x256xf32> to vector<128x256xbf16>
    %c0_12 = arith.constant 0 : index
    %c0_13 = arith.constant 0 : index
    %18 = vector.load %arg6[%c0_12, %c0_13] : memref<256x256xbf16, #tpu.memory_space<vmem>>, vector<256x256xbf16>
    %cst_14 = arith.constant dense<0.000000e+00> : vector<128x256xf32>
    %19 = tpu.matmul %17, %18, %cst_14 {dimension_numbers = #tpu.dot_dimension_numbers<[1], [0], [0], [1], [0, 0, 1, 1], [], []>} : vector<128x256xbf16>, vector<256x256xbf16>, vector<128x256xf32> -> vector<128x256xf32>
    %c0_15 = arith.constant 0 : index
    %c0_16 = arith.constant 0 : index
    %20 = vector.load %arg7[%c0_15, %c0_16] : memref<1x256xf32, #tpu.memory_space<vmem>>, vector<1x256xf32>
    %21 = vector.broadcast %20 : vector<1x256xf32> to vector<128x256xf32>
    %22 = arith.addf %19, %21 : vector<128x256xf32>
    %23 = math.absf %22 : vector<128x256xf32>
    %cst_17 = arith.constant 0.000000e+00 : f32
    %24 = vector.broadcast %cst_17 : f32 to vector<128x256xf32>
    %25 = arith.subf %24, %23 : vector<128x256xf32>
    %26 = math.exp %25 : vector<128x256xf32>
    %cst_18 = arith.constant 1.000000e+00 : f32
    %27 = vector.broadcast %cst_18 : f32 to vector<128x256xf32>
    %28 = arith.addf %27, %26 : vector<128x256xf32>
    %29 = tpu.reciprocal %28 {approx = true} : vector<128x256xf32> -> vector<128x256xf32>
    %cst_19 = arith.constant 0.000000e+00 : f32
    %30 = vector.broadcast %cst_19 : f32 to vector<128x256xf32>
    %31 = arith.cmpf oge, %22, %30 : vector<128x256xf32>
    %32 = arith.mulf %26, %29 : vector<128x256xf32>
    %33 = arith.select %31, %29, %32 : vector<128x256xi1>, vector<128x256xf32>
    %c0_20 = arith.constant 0 : index
    %c0_21 = arith.constant 0 : index
    %34 = vector.load %arg8[%c0_20, %c0_21] : memref<128x256xf32, #tpu.memory_space<vmem>>, vector<128x256xf32>
    tpu.vector_store %arg8[%c0_20, %c0_21], %33 {strides = array<i32>} : memref<128x256xf32, #tpu.memory_space<vmem>>, vector<128x256xf32>,
    return
  }
  func.func @transform_0(%arg0: i32) -> (i32, i32) {
    %c0_i32 = arith.constant 0 : i32
    %c0_i32_0 = arith.constant 0 : i32
    return %arg0, %c0_i32 : i32, i32
  }
  func.func @transform_1(%arg0: i32) -> (i32, i32) {
    %c0_i32 = arith.constant 0 : i32
    %c0_i32_0 = arith.constant 0 : i32
    %c0_i32_1 = arith.constant 0 : i32
    return %c0_i32, %c0_i32_0 : i32, i32
  }
  func.func @transform_2(%arg0: i32) -> (i32, i32) {
    %c0_i32 = arith.constant 0 : i32
    %c0_i32_0 = arith.constant 0 : i32
    %c0_i32_1 = arith.constant 0 : i32
    return %c0_i32, %c0_i32_0 : i32, i32
  }
  func.func @transform_3(%arg0: i32) -> (i32, i32) {
    %c0_i32 = arith.constant 0 : i32
    %c0_i32_0 = arith.constant 0 : i32
    %c0_i32_1 = arith.constant 0 : i32
    return %c0_i32, %c0_i32_0 : i32, i32
  }
  func.func @transform_4(%arg0: i32) -> (i32, i32) {
    %c0_i32 = arith.constant 0 : i32
    %c0_i32_0 = arith.constant 0 : i32
    %c0_i32_1 = arith.constant 0 : i32
    return %c0_i32, %c0_i32_0 : i32, i32
  }
  func.func @transform_5(%arg0: i32) -> (i32, i32) {
    %c0_i32 = arith.constant 0 : i32
    %c0_i32_0 = arith.constant 0 : i32
    %c0_i32_1 = arith.constant 0 : i32
    return %c0_i32, %c0_i32_0 : i32, i32
  }
  func.func @transform_6(%arg0: i32) -> (i32, i32) {
    %c0_i32 = arith.constant 0 : i32
    %c0_i32_0 = arith.constant 0 : i32
    %c0_i32_1 = arith.constant 0 : i32
    return %c0_i32, %c0_i32_0 : i32, i32
  }
  func.func @transform_7(%arg0: i32) -> (i32, i32) {
    %c0_i32 = arith.constant 0 : i32
    %c0_i32_0 = arith.constant 0 : i32
    return %arg0, %c0_i32 : i32, i32
  }
}

</mosaic_0001>

<bundles_post_ra>
// kernel: autoencoder2d_apply.1
= control target key start
LH: loop header
LB: loop body
LE: loop exit
PB: predicated region body
PF: predicated region fallthrough
CT: control target
= control target key end

     0   :  { %s2231_s24 = smov 0   ;;  %s3080_s0 = inlined_call_operand.vmem [shape: f32[256,256], index: 0, kind: input, shape index: {}]   ;;  %s3081_s1 = inlined_call_operand.vmem [shape: bf16[256,256], index: 1, kind: input, shape index: {}]   ;;  %s3082_s2 = inlined_call_operand.vmem [shape: f32[1,256], index: 2, kind: input, shape index: {}]   ;;  %s3083_s3 = inlined_call_operand.vmem [shape: bf16[256,256], index: 3, kind: input, shape index: {}]   ;;  %s3084_s4 = inlined_call_operand.vmem [shape: f32[1,256], index: 4, kind: input, shape index: {}]   ;;  %s3085_s5 = inlined_call_operand.vmem [shape: bf16[256,256], index: 5, kind: input, shape index: {}]   ;;  %s3086_s6 = inlined_call_operand.vmem [shape: f32[1,256], index: 6, kind: input, shape index: {}]   ;;  %s3087_s7 = inlined_call_operand.vmem [shape: f32[256,256], index: 7, kind: output, shape index: {}]  }
   0x1 LB: > { %s1760_s25 = sadd.s32 4294967295, %s2189_s24   ;;  %p1764_p0 = scmp.ge.s32.totalorder %s2189_s24, 1  ;;  %s2189_s24 = sphi %s2231_s24, %s17_s24  }
   0x2   : > { %p239_p1 = scmp.lt.s32.totalorder %s2189_s24, 3 }
   0x4   : > { %p240_p2 = pnand %p1764_p0, %p239_p1 }
   0x5   : > { %s1765_s13 = sshll.u32 (!%p240_p2), %s1760_s25, 4 }
   0x6   : > { %243 = sbr.rel (%p240_p2) target bundleno = 798 (0x31e), region = 48  ;;  %p274_p3 = scmp.lt.s32.totalorder (!%p240_p2), %s1765_s13, 31 }
   0xb   : > { %v1911_v0 = vld [vmem:[%s3081_s1 + $0x74] ss:$8 sps:$4 sm:$0xff]   ;;  %v1913_v1 = vld [vmem:[%s3081_s1 + $0x70] ss:$8 sps:$4 sm:$0xff]   ;;  %v1914_v2 = vld [vmem:[%s3081_s1 + $0x64] ss:$8 sps:$4 sm:$0xff]  }
   0xc   : > { %539 = vmatprep.subr.bf16.mxu0 %v1911_v0  ;;  %v1916_v3 = vld [vmem:[%s3081_s1 + $0x60] ss:$8 sps:$4 sm:$0xff]   ;;  %v1917_v4 = vld [vmem:[%s3081_s1 + $0x54] ss:$8 sps:$4 sm:$0xff]   ;;  %v1919_v5 = vld [vmem:[%s3081_s1 + $0x50] ss:$8 sps:$4 sm:$0xff]  }
   0xd   : > { %540 = vmatpush1.bf16.msra.mxu0 %v1913_v1  ;;  %v1920_v6 = vld [vmem:[%s3081_s1 + $0x44] ss:$8 sps:$4 sm:$0xff]   ;;  %v1922_v7 = vld [vmem:[%s3081_s1 + $0x40] ss:$8 sps:$4 sm:$0xff]   ;;  %s3089_s13 = smov (!%p274_p3, %s1765_s13), 31 }
   0xe   : > { %541 = vmatprep.subr.bf16.mxu0 %v1914_v2  ;;  %v1923_v8 = vld [vmem:[%s3081_s1 + $0x34] ss:$8 sps:$4 sm:$0xff]   ;;  %v1925_v9 = vld [vmem:[%s3081_s1 + $0x30] ss:$8 sps:$4 sm:$0xff]   ;;  %s1869_s25 = sshll.u32 %s3089_s13, 4 }
   0xf   : > { %v1926_v10 = vld [vmem:[%s3081_s1 + $0x24] ss:$8 sps:$4 sm:$0xff]   ;;  %s2280_s30 = scalar_lea.vmem %s3080_s0, %s1869_s25  ;;  %v1928_v11 = vld [vmem:[%s3081_s1 + $0x20] ss:$8 sps:$4 sm:$0xff]   ;;  %v1929_v12 = vld [vmem:[%s3081_s1 + $0x14] ss:$8 sps:$4 sm:$0xff]   ;;  %s2873_s11 = scalar_lea.vmem %s3087_s7, %s1869_s25 }
  0x10   : > { %v288_v13 = vld [vmem:[%s2280_s30 + $0x8] sm:$0xff]  ;;  %v290_v14 = vld [vmem:[%s2280_s30 + $0x18] sm:$0xff]  ;;  %v287_v50 = vld [vmem:[%s2280_s30] sm:$0xff] }
  0x11   : > { %542 = vmatpush1.bf16.msra.mxu0 %v1916_v3  ;;  %v320_v15 = vpack.c.bf16 %v290_v14, %v288_v13  ;;  %v1931_v16 = vld [vmem:[%s3081_s1 + $0x10] ss:$8 sps:$4 sm:$0xff]   ;;  %v1932_v17 = vld [vmem:[%s3081_s1 + $0x4] ss:$8 sps:$4 sm:$0xff]   ;;  %v1934_v18 = vld [vmem:[%s3081_s1] ss:$8 sps:$4 sm:$0xff]  }
  0x12   : > { %543 = vmatprep.subr.bf16.mxu0 %v1917_v4  ;;  %v1935_v19 = vld [vmem:[%s3081_s1 + $0xf4] ss:$8 sps:$4 sm:$0xff]   ;;  %v1937_v20 = vld [vmem:[%s3081_s1 + $0xf0] ss:$8 sps:$4 sm:$0xff]   ;;  %v1938_v21 = vld [vmem:[%s3081_s1 + $0xe4] ss:$8 sps:$4 sm:$0xff]  }
  0x13   : > { %571 = vmatprep.mubr.bf16.mxu0 %v320_v15  ;;  %v1959_v22 = vld [vmem:[%s3083_s3 + $0x74] ss:$8 sps:$4 sm:$0xff]   ;;  %v1961_v23 = vld [vmem:[%s3083_s3 + $0x70] ss:$8 sps:$4 sm:$0xff]   ;;  %v1940_v24 = vld [vmem:[%s3081_s1 + $0xe0] ss:$8 sps:$4 sm:$0xff]  }
  0x14   : > { %904 = vmatprep.subr.bf16.mxu1 %v1959_v22  ;;  %v1962_v25 = vld [vmem:[%s3083_s3 + $0x64] ss:$8 sps:$4 sm:$0xff]   ;;  %v1941_v26 = vld [vmem:[%s3081_s1 + $0xd4] ss:$8 sps:$4 sm:$0xff]   ;;  %v1964_v27 = vld [vmem:[%s3083_s3 + $0x60] ss:$8 sps:$4 sm:$0xff]  }
  0x15   : > { %544 = vmatpush1.bf16.msra.mxu0 %v1919_v5  ;;  %905 = vmatpush1.bf16.msra.mxu1 %v1961_v23  ;;  %v1965_v28 = vld [vmem:[%s3083_s3 + $0x54] ss:$8 sps:$4 sm:$0xff]   ;;  %v1943_v29 = vld [vmem:[%s3081_s1 + $0xd0] ss:$8 sps:$4 sm:$0xff]   ;;  %v1944_v30 = vld [vmem:[%s3081_s1 + $0xc4] ss:$8 sps:$4 sm:$0xff]  }
  0x16   : > { %545 = vmatprep.subr.bf16.mxu0 %v1920_v6  ;;  %906 = vmatprep.subr.bf16.mxu1 %v1962_v25  ;;  %v1967_v31 = vld [vmem:[%s3083_s3 + $0x50] ss:$8 sps:$4 sm:$0xff]   ;;  %v1968_v32 = vld [vmem:[%s3083_s3 + $0x44] ss:$8 sps:$4 sm:$0xff]   ;;  %v1946_v33 = vld [vmem:[%s3081_s1 + $0xc0] ss:$8 sps:$4 sm:$0xff]  }
  0x17   : > { %v1947_v34 = vld [vmem:[%s3081_s1 + $0xb4] ss:$8 sps:$4 sm:$0xff]   ;;  %v1970_v35 = vld [vmem:[%s3083_s3 + $0x40] ss:$8 sps:$4 sm:$0xff]   ;;  %v1949_v37 = vld [vmem:[%s3081_s1 + $0xb0] ss:$8 sps:$4 sm:$0xff]  }
  0x18   : > { %v1971_v36 = vld [vmem:[%s3083_s3 + $0x34] ss:$8 sps:$4 sm:$0xff]   ;;  %v1950_v38 = vld [vmem:[%s3081_s1 + $0xa4] ss:$8 sps:$4 sm:$0xff]   ;;  %v1973_v39 = vld [vmem:[%s3083_s3 + $0x30] ss:$8 sps:$4 sm:$0xff]  }
  0x19   : > { %546 = vmatpush1.bf16.msra.mxu0 %v1922_v7  ;;  %907 = vmatpush1.bf16.msra.mxu1 %v1964_v27  ;;  %v1974_v40 = vld [vmem:[%s3083_s3 + $0x24] ss:$8 sps:$4 sm:$0xff]   ;;  %v1952_v41 = vld [vmem:[%s3081_s1 + $0xa0] ss:$8 sps:$4 sm:$0xff]   ;;  %v1953_v43 = vld [vmem:[%s3081_s1 + $0x94] ss:$8 sps:$4 sm:$0xff]  }
  0x1a   : > { %547 = vmatprep.subr.bf16.mxu0 %v1923_v8  ;;  %908 = vmatprep.subr.bf16.mxu1 %v1965_v28  ;;  %v1976_v42 = vld [vmem:[%s3083_s3 + $0x20] ss:$8 sps:$4 sm:$0xff]   ;;  %v1977_v44 = vld [vmem:[%s3083_s3 + $0x14] ss:$8 sps:$4 sm:$0xff]   ;;  %v1955_v45 = vld [vmem:[%s3081_s1 + $0x90] ss:$8 sps:$4 sm:$0xff]  }
  0x1b   : > { %v1979_v46 = vld [vmem:[%s3083_s3 + $0x10] ss:$8 sps:$4 sm:$0xff]   ;;  %v1956_v47 = vld [vmem:[%s3081_s1 + $0x84] ss:$8 sps:$4 sm:$0xff]   ;;  %v1958_v49 = vld [vmem:[%s3081_s1 + $0x80] ss:$8 sps:$4 sm:$0xff]  }
  0x1c   : > { %v1980_v48 = vld [vmem:[%s3083_s3 + $0x4] ss:$8 sps:$4 sm:$0xff]   ;;  %v289_v51 = vld [vmem:[%s2280_s30 + $0x10] sm:$0xff]  ;;  %v1982_v52 = vld [vmem:[%s3083_s3] ss:$8 sps:$4 sm:$0xff]  }
  0x1d   : > { %548 = vmatpush1.bf16.msra.mxu0 %v1925_v9  ;;  %909 = vmatpush1.bf16.msra.mxu1 %v1967_v31  ;;  %v292_v53 = vld [vmem:[%s2280_s30 + $0x28] sm:$0xff]  ;;  %v294_v54 = vld [vmem:[%s2280_s30 + $0x38] sm:$0xff]  ;;  %v319_v56 = vpack.c.bf16 %v289_v51, %v287_v50  ;;  %v291_v60 = vld [vmem:[%s2280_s30 + $0x20] sm:$0xff] }
  0x1e   : > { %549 = vmatprep.subr.bf16.mxu0 %v1926_v10  ;;  %910 = vmatprep.subr.bf16.mxu1 %v1968_v32  ;;  %v1983_v55 = vld [vmem:[%s3083_s3 + $0xf4] ss:$8 sps:$4 sm:$0xff]   ;;  %v322_v57 = vpack.c.bf16 %v294_v54, %v292_v53  ;;  %v1985_v58 = vld [vmem:[%s3083_s3 + $0xf0] ss:$8 sps:$4 sm:$0xff]   ;;  %v1986_v59 = vld [vmem:[%s3083_s3 + $0xe4] ss:$8 sps:$4 sm:$0xff]  }
  0x1f   : > { %v293_v61 = vld [vmem:[%s2280_s30 + $0x30] sm:$0xff]  ;;  %v1988_v62 = vld [vmem:[%s3083_s3 + $0xe0] ss:$8 sps:$4 sm:$0xff]   ;;  %v298_v0 = vld [vmem:[%s2280_s30 + $0x58] sm:$0xff] }
  0x20   : > { %v296_v63 = vld [vmem:[%s2280_s30 + $0x48] sm:$0xff]  ;;  %v1989_v1 = vld [vmem:[%s3083_s3 + $0xd4] ss:$8 sps:$4 sm:$0xff]   ;;  %v321_v2 = vpack.c.bf16 %v293_v61, %v291_v60  ;;  %v1991_v4 = vld [vmem:[%s3083_s3 + $0xd0] ss:$8 sps:$4 sm:$0xff]  }
  0x21   : > { %550 = vmatpush1.bf16.msra.mxu0 %v1928_v11  ;;  %911 = vmatpush1.bf16.msra.mxu1 %v1970_v35  ;;  %v324_v3 = vpack.c.bf16 %v298_v0, %v296_v63  ;;  %v1992_v5 = vld [vmem:[%s3083_s3 + $0xc4] ss:$8 sps:$4 sm:$0xff]   ;;  %v297_v7 = vld [vmem:[%s2280_s30 + $0x50] sm:$0xff]  ;;  %v1994_v8 = vld [vmem:[%s3083_s3 + $0xc0] ss:$8 sps:$4 sm:$0xff]  }
  0x22   : > { %551 = vmatprep.subr.bf16.mxu0 %v1929_v12  ;;  %912 = vmatprep.subr.bf16.mxu1 %v1971_v36  ;;  %v295_v6 = vld [vmem:[%s2280_s30 + $0x40] sm:$0xff]  ;;  %v300_v9 = vld [vmem:[%s2280_s30 + $0x68] sm:$0xff]  ;;  %v302_v10 = vld [vmem:[%s2280_s30 + $0x78] sm:$0xff] }
  0x23   : > { %v1995_v11 = vld [vmem:[%s3083_s3 + $0xb4] ss:$8 sps:$4 sm:$0xff]   ;;  %v323_v12 = vpack.c.bf16 %v297_v7, %v295_v6  ;;  %v326_v13 = vpack.c.bf16 %v302_v10, %v300_v9  ;;  %v1997_v14 = vld [vmem:[%s3083_s3 + $0xb0] ss:$8 sps:$4 sm:$0xff]   ;;  %v299_v15 = vld [vmem:[%s2280_s30 + $0x60] sm:$0xff]  ;;  %v369_v10 = vlaneseq }
  0x24   : > { %v305_v22 = vld [vmem:[%s2280_s30 + $0x90] sm:$0xff]  ;;  %v308_v23 = vld [vmem:[%s2280_s30 + $0xa8] sm:$0xff]  ;;  %v307_v27 = vld [vmem:[%s2280_s30 + $0xa0] sm:$0xff] }
  0x25   : > { %552 = vmatpush1.bf16.msra.mxu0 %v1931_v16  ;;  %913 = vmatpush1.bf16.msra.mxu1 %v1973_v39  ;;  %v301_v16 = vld [vmem:[%s2280_s30 + $0x70] sm:$0xff]  ;;  %v316_v35 = vld [vmem:[%s2280_s30 + $0xe8] sm:$0xff]  ;;  %v318_v36 = vld [vmem:[%s2280_s30 + $0xf8] sm:$0xff] }
  0x26   : > { %553 = vmatprep.subr.bf16.mxu0 %v1932_v17  ;;  %914 = vmatprep.subr.bf16.mxu1 %v1974_v40  ;;  %v304_v17 = vld [vmem:[%s2280_s30 + $0x88] sm:$0xff]  ;;  %v309_v28 = vld [vmem:[%s2280_s30 + $0xb0] sm:$0xff]  ;;  %v315_v39 = vld [vmem:[%s2280_s30 + $0xe0] sm:$0xff] }
  0x27   : > { %v329_v31 = vpack.c.bf16 %v309_v28, %v307_v27  ;;  %v317_v40 = vld [vmem:[%s2280_s30 + $0xf0] sm:$0xff]  ;;  %v2484_v50 = vld [vmem:[%s3085_s5 + $0x64] ss:$8 sps:$4 sm:$0xff]   ;;  %v2490_v51 = vld [vmem:[%s3085_s5 + $0x60] ss:$8 sps:$4 sm:$0xff]  }
  0x28   : > { %v2502_v53 = vld [vmem:[%s3085_s5 + $0x50] ss:$8 sps:$4 sm:$0xff]   ;;  %v2508_v54 = vld [vmem:[%s3085_s5 + $0x44] ss:$8 sps:$4 sm:$0xff]   ;;  %v2544_v60 = vld [vmem:[%s3085_s5 + $0x14] ss:$8 sps:$4 sm:$0xff]  }
  0x29   : > { %554 = vmatpush1.bf16.msra.mxu0 %v1934_v18  ;;  %915 = vmatpush1.bf16.msra.mxu1 %v1976_v42  ;;  %v306_v18 = vld [vmem:[%s2280_s30 + $0x98] sm:$0xff]  ;;  %v1998_v42 = vld [vmem:[%s3083_s3 + $0xa4] ss:$8 sps:$4 sm:$0xff]   ;;  %v2562_v63 = vld [vmem:[%s3085_s5] ss:$8 sps:$4 sm:$0xff]  }
  0x2a   : > { %555 = vmatprep.subr.bf16.mxu0 %v1935_v19  ;;  %916 = vmatprep.subr.bf16.mxu1 %v1977_v44  ;;  %v325_v19 = vpack.c.bf16 %v301_v16, %v299_v15  ;;  %v2001_v44 = vld [vmem:[%s3083_s3 + $0x94] ss:$8 sps:$4 sm:$0xff]   ;;  %v2550_v61 = vld [vmem:[%s3085_s5 + $0x10] ss:$8 sps:$4 sm:$0xff]   ;;  %v2604_v6 = vld [vmem:[%s3085_s5 + $0xc4] ss:$8 sps:$4 sm:$0xff]  }
  0x2b   : > { %v2568_v0 = vld [vmem:[%s3085_s5 + $0xf4] ss:$8 sps:$4 sm:$0xff]   ;;  %v2610_v7 = vld [vmem:[%s3085_s5 + $0xc0] ss:$8 sps:$4 sm:$0xff]   ;;  %v2622_v9 = vld [vmem:[%s3085_s5 + $0xb0] ss:$8 sps:$4 sm:$0xff]  }
  0x2d   : > { %556 = vmatpush2.bf16.msra.mxu0 %v1937_v20  ;;  %917 = vmatpush1.bf16.msra.mxu1 %v1979_v46  ;;  %v328_v20 = vpack.c.bf16 %v306_v18, %v304_v17  ;;  %v2004_v46 = vld [vmem:[%s3083_s3 + $0x84] ss:$8 sps:$4 sm:$0xff]  }
  0x2e   : > { %557 = vmatprep.subr.bf16.mxu0 %v1938_v21  ;;  %918 = vmatprep.subr.bf16.mxu1 %v1980_v48  ;;  %v303_v21 = vld [vmem:[%s2280_s30 + $0x80] sm:$0xff]  ;;  %v2476_v48 = vld [vmem:[%s3085_s5 + $0x70] ss:$8 sps:$4 sm:$0xff]  }
  0x2f   : > { %v327_v25 = vpack.c.bf16 %v305_v22, %v303_v21 }
  0x31   : > { %558 = vmatpush2.bf16.msra.mxu0 %v1940_v24  ;;  %919 = vmatpush1.bf16.msra.mxu1 %v1982_v52  ;;  %v310_v24 = vld [vmem:[%s2280_s30 + $0xb8] sm:$0xff] }
  0x32   : > { %559 = vmatprep.subr.bf16.mxu0 %v1941_v26  ;;  %920 = vmatprep.subr.bf16.mxu1 %v1983_v55  ;;  %v330_v26 = vpack.c.bf16 %v310_v24, %v308_v23  ;;  %v2496_v52 = vld [vmem:[%s3085_s5 + $0x54] ss:$8 sps:$4 sm:$0xff]   ;;  %v2514_v55 = vld [vmem:[%s3085_s5 + $0x40] ss:$8 sps:$4 sm:$0xff]  }
  0x35   : > { %560 = vmatpush2.bf16.msra.mxu0 %v1943_v29  ;;  %921 = vmatpush2.bf16.msra.mxu1 %v1985_v58  ;;  %v312_v29 = vld [vmem:[%s2280_s30 + $0xc8] sm:$0xff] }
  0x36   : > { %561 = vmatprep.subr.bf16.mxu0 %v1944_v30  ;;  %922 = vmatprep.subr.bf16.mxu1 %v1986_v59  ;;  %v314_v30 = vld [vmem:[%s2280_s30 + $0xd8] sm:$0xff]  ;;  %v2532_v58 = vld [vmem:[%s3085_s5 + $0x24] ss:$8 sps:$4 sm:$0xff]   ;;  %v2538_v59 = vld [vmem:[%s3085_s5 + $0x20] ss:$8 sps:$4 sm:$0xff]  }
  0x37   : > { %v332_v32 = vpack.c.bf16 %v314_v30, %v312_v29 }
  0x39   : > { %562 = vmatpush2.bf16.msra.mxu0 %v1946_v33  ;;  %923 = vmatpush2.bf16.msra.mxu1 %v1988_v62  ;;  %v311_v33 = vld [vmem:[%s2280_s30 + $0xc0] sm:$0xff] }
  0x3a   : > { %563 = vmatprep.subr.bf16.mxu0 %v1947_v34  ;;  %924 = vmatprep.subr.bf16.mxu1 %v1989_v1  ;;  %v313_v34 = vld [vmem:[%s2280_s30 + $0xd0] sm:$0xff]  ;;  %v2556_v62 = vld [vmem:[%s3085_s5 + $0x4] ss:$8 sps:$4 sm:$0xff]  }
  0x3b   : > { %v2574_v1 = vld [vmem:[%s3085_s5 + $0xf0] ss:$8 sps:$4 sm:$0xff]  }
  0x3d   : > { %564 = vmatpush2.bf16.msra.mxu0 %v1949_v37  ;;  %925 = vmatpush2.bf16.msra.mxu1 %v1991_v4  ;;  %v331_v37 = vpack.c.bf16 %v313_v34, %v311_v33  ;;  %v2592_v4 = vld [vmem:[%s3085_s5 + $0xd4] ss:$8 sps:$4 sm:$0xff]  }
  0x3e   : > { %565 = vmatprep.subr.bf16.mxu0 %v1950_v38  ;;  %926 = vmatprep.subr.bf16.mxu1 %v1992_v5  ;;  %v334_v38 = vpack.c.bf16 %v318_v36, %v316_v35  ;;  %v2598_v5 = vld [vmem:[%s3085_s5 + $0xd0] ss:$8 sps:$4 sm:$0xff]  }
  0x41   : > { %566 = vmatpush2.bf16.msra.mxu0 %v1952_v41  ;;  %927 = vmatpush2.bf16.msra.mxu1 %v1994_v8  ;;  %v333_v41 = vpack.c.bf16 %v317_v40, %v315_v39  ;;  %v2616_v8 = vld [vmem:[%s3085_s5 + $0xb4] ss:$8 sps:$4 sm:$0xff]  }
  0x42   : > { %567 = vmatprep.subr.bf16.mxu0 %v1953_v43  ;;  %928 = vmatprep.subr.bf16.mxu1 %v1995_v11  ;;  %v2000_v43 = vld [vmem:[%s3083_s3 + $0xa0] ss:$8 sps:$4 sm:$0xff]   ;;  %v370_v11 = vshrl.u32 %v369_v10, 7 }
  0x45   : > { %568 = vmatpush2.bf16.msra.mxu0 %v1955_v45  ;;  %929 = vmatpush2.bf16.msra.mxu1 %v1997_v14  ;;  %v2003_v45 = vld [vmem:[%s3083_s3 + $0x90] ss:$8 sps:$4 sm:$0xff]   ;;  %v367_v14 = vld [vmem:[%s3082_s2] sm:$0x3] }
  0x46   : > { %569 = vmatprep.subr.bf16.mxu0 %v1956_v47  ;;  %930 = vmatprep.subr.bf16.mxu1 %v1998_v42  ;;  %v2006_v47 = vld [vmem:[%s3083_s3 + $0x80] ss:$8 sps:$4 sm:$0xff]  }
  0x49   : > { %570 = vmatpush2.bf16.msra.mxu0 %v1958_v49  ;;  %931 = vmatpush2.bf16.msra.mxu1 %v2000_v43  ;;  %v2009_v49 = vld [vmem:[%s3085_s5 + $0x74] ss:$8 sps:$4 sm:$0xff]  }
  0x4a   : > { %932 = vmatprep.subr.bf16.mxu1 %v2001_v44  ;;  %1269 = vmatprep.subr.bf16.mxu0 %v2009_v49 }
  0x4c   : > { %572 = vmatmul.mubr.bf16.vlgmr.msra.gmra.mxu0 %v319_v56  ;;  %v2520_v56 = vld [vmem:[%s3085_s5 + $0x34] ss:$8 sps:$4 sm:$0xff]  }
  0x4d   : > { %581 = vmatprep.mubr.bf16.mxu0 %v322_v57  ;;  %933 = vmatpush2.bf16.msra.mxu1 %v2003_v45  ;;  %v2526_v57 = vld [vmem:[%s3085_s5 + $0x30] ss:$8 sps:$4 sm:$0xff]  }
  0x4e   : > { %934 = vmatprep.subr.bf16.mxu1 %v2004_v46  ;;  %1270 = vmatpush1.bf16.msra.mxu0 %v2476_v48 }
  0x4f   : > { %1271 = vmatprep.subr.bf16.mxu0 %v2484_v50 }
  0x51   : > { %935 = vmatpush2.bf16.msra.mxu1 %v2006_v47 }
  0x52   : > { %1871 = vmatprep.subr.bf16.mxu1 %v2009_v49  ;;  %1272 = vmatpush1.bf16.msra.mxu0 %v2490_v51 }
  0x53   : > { %1273 = vmatprep.subr.bf16.mxu0 %v2496_v52 }
  0x54   : > { %582 = vmatmul.mubr.bf16.gmra.mxu0 %v321_v2  ;;  %v2580_v2 = vld [vmem:[%s3085_s5 + $0xe4] ss:$8 sps:$4 sm:$0xff]  }
  0x55   : > { %591 = vmatprep.mubr.bf16.mxu0 %v324_v3  ;;  %v2586_v3 = vld [vmem:[%s3085_s5 + $0xe0] ss:$8 sps:$4 sm:$0xff]  }
  0x56   : > { %1274 = vmatpush1.bf16.msra.mxu0 %v2502_v53 }
  0x57   : > { %1275 = vmatprep.subr.bf16.mxu0 %v2508_v54 }
  0x5a   : > { %1276 = vmatpush1.bf16.msra.mxu0 %v2514_v55 }
  0x5b   : > { %1277 = vmatprep.subr.bf16.mxu0 %v2520_v56 }
  0x5c   : > { %592 = vmatmul.mubr.bf16.gmra.mxu0 %v323_v12  ;;  %v2626_v12 = vsub.s32 1, %v370_v11 }
  0x5d   : > { %601 = vmatprep.mubr.bf16.mxu0 %v326_v13  ;;  %v2628_v13 = vsub.s32 0, %v370_v11 }
  0x5e   : > { %1278 = vmatpush1.bf16.msra.mxu0 %v2526_v57  ;;  %v2634_v16 = vrot.slane %v367_v14, %v2626_v12 }
  0x5f   : > { %1279 = vmatprep.subr.bf16.mxu0 %v2532_v58  ;;  %v2637_v17 = vrot.slane %v367_v14, %v2628_v13 }
  0x62   : > { %1280 = vmatpush1.bf16.msra.mxu0 %v2538_v59 }
  0x63   : > { %1281 = vmatprep.subr.bf16.mxu0 %v2544_v60 }
  0x64   : > { %602 = vmatmul.mubr.bf16.gmra.mxu0 %v325_v19 }
  0x65   : > { %611 = vmatprep.mubr.bf16.mxu0 %v328_v20 }
  0x66   : > { %1282 = vmatpush1.bf16.msra.mxu0 %v2550_v61 }
  0x67   : > { %1283 = vmatprep.subr.bf16.mxu0 %v2556_v62 }
  0x6a   : > { %1284 = vmatpush1.bf16.msra.mxu0 %v2562_v63 }
  0x6b   : > { %1285 = vmatprep.subr.bf16.mxu0 %v2568_v0 }
  0x6c   : > { %612 = vmatmul.mubr.bf16.gmra.mxu0 %v327_v25 }
  0x6d   : > { %621 = vmatprep.mubr.bf16.mxu0 %v330_v26 }
  0x6e   : > { %1286 = vmatpush2.bf16.msra.mxu0 %v2574_v1 }
  0x6f   : > { %1287 = vmatprep.subr.bf16.mxu0 %v2580_v2 }
  0x72   : > { %1288 = vmatpush2.bf16.msra.mxu0 %v2586_v3 }
  0x73   : > { %1289 = vmatprep.subr.bf16.mxu0 %v2592_v4 }
  0x74   : > { %622 = vmatmul.mubr.bf16.gmra.mxu0 %v329_v31 }
  0x75   : > { %631 = vmatprep.mubr.bf16.mxu0 %v332_v32 }
  0x76   : > { %1290 = vmatpush2.bf16.msra.mxu0 %v2598_v5 }
  0x77   : > { %1291 = vmatprep.subr.bf16.mxu0 %v2604_v6 }
  0x7a   : > { %1292 = vmatpush2.bf16.msra.mxu0 %v2610_v7 }
  0x7b   : > { %1293 = vmatprep.subr.bf16.mxu0 %v2616_v8 }
  0x7c   : > { %632 = vmatmul.mubr.bf16.gmra.mxu0 %v331_v37 }
  0x7d   : > { %641 = vmatprep.mubr.bf16.mxu0 %v334_v38 }
  0x7e   : > { %1294 = vmatpush2.bf16.msra.mxu0 %v2622_v9 }
  0x84   : > { %642 = vmatmul.mubr.bf16.gmra.mxu0 %v333_v41 }
 0x10c   : > { %v573_v15 = vpop.f32.mrf.mxu0 }
 0x10d   : > { %v574_v22 = vadd.f32 %v573_v15, %v2637_v17 }
 0x10e   : > { %v575_v18 = vpop.f32.mrf.mxu0 }
 0x10f   : > { %v576_v20 = vadd.f32 %v575_v18, %v2634_v16  ;;  %v652_v29 = vmax.f32 %v574_v22, 0.0 }
 0x110   : > { %v577_v19 = vpop.f32.mrf.mxu0 }
 0x111   : > { %v578_v21 = vadd.f32 %v577_v19, %v2637_v17  ;;  %v653_v27 = vmax.f32 %v576_v20, 0.0 }
 0x112   : > { %v579_v23 = vpop.f32.mrf.mxu0 }
 0x113   : > { %v580_v24 = vadd.f32 %v579_v23, %v2634_v16  ;;  %v654_v25 = vmax.f32 %v578_v21, 0.0 }
 0x114   : > { %v583_v26 = vpop.f32.mrf.mxu0 }
 0x115   : > { %v655_v28 = vmax.f32 %v580_v24, 0.0  ;;  %v684_v32 = vpack.c.bf16 %v654_v25, %v652_v29  ;;  %v584_v36 = vadd.f32 %v583_v26, %v2637_v17 }
 0x116   : > { %v585_v30 = vpop.f32.mrf.mxu0 }
 0x117   : > { %v685_v31 = vpack.c.bf16 %v655_v28, %v653_v27  ;;  %v586_v34 = vadd.f32 %v585_v30, %v2634_v16  ;;  %v656_v43 = vmax.f32 %v584_v36, 0.0 }
 0x118   : > { %v587_v33 = vpop.f32.mrf.mxu0 }
 0x119   : > { %v588_v35 = vadd.f32 %v587_v33, %v2637_v17  ;;  %936 = vmatprep.mubr.bf16.mxu1 %v685_v31  ;;  %v657_v41 = vmax.f32 %v586_v34, 0.0 }
 0x11a   : > { %v589_v37 = vpop.f32.mrf.mxu0  ;;  %937 = vmatmul.mubr.bf16.vlgmr.msra.gmra.mxu1 %v684_v32 }
 0x11b   : > { %v590_v38 = vadd.f32 %v589_v37, %v2634_v16  ;;  %1887 = vmatpush1.bf16.msra.mxu1 %v2476_v48  ;;  %v658_v39 = vmax.f32 %v588_v35, 0.0 }
 0x11c   : > { %v593_v40 = vpop.f32.mrf.mxu0  ;;  %1872 = vmatprep.subr.bf16.mxu1 %v2484_v50 }
 0x11d   : > { %v659_v42 = vmax.f32 %v590_v38, 0.0  ;;  %v686_v46 = vpack.c.bf16 %v658_v39, %v656_v43  ;;  %v594_v48 = vadd.f32 %v593_v40, %v2637_v17 }
 0x11e   : > { %v595_v44 = vpop.f32.mrf.mxu0 }
 0x11f   : > { %v687_v45 = vpack.c.bf16 %v659_v42, %v657_v41  ;;  %1888 = vmatpush1.bf16.msra.mxu1 %v2490_v51  ;;  %v596_v49 = vadd.f32 %v595_v44, %v2634_v16 }
 0x120   : > { %v597_v47 = vpop.f32.mrf.mxu0  ;;  %1873 = vmatprep.subr.bf16.mxu1 %v2496_v52  ;;  %v660_v52 = vmax.f32 %v594_v48, 0.0 }
 0x121   : > { %v598_v10 = vadd.f32 %v597_v47, %v2637_v17  ;;  %946 = vmatprep.mubr.bf16.mxu1 %v687_v45  ;;  %v661_v51 = vmax.f32 %v596_v49, 0.0 }
 0x122   : > { %v599_v11 = vpop.f32.mrf.mxu0  ;;  %947 = vmatmul.mubr.bf16.gmra.mxu1 %v686_v46 }
 0x123   : > { %v600_v50 = vadd.f32 %v599_v11, %v2634_v16  ;;  %1889 = vmatpush1.bf16.msra.mxu1 %v2502_v53  ;;  %v662_v14 = vmax.f32 %v598_v10, 0.0 }
 0x124   : > { %v603_v15 = vpop.f32.mrf.mxu0  ;;  %1874 = vmatprep.subr.bf16.mxu1 %v2508_v54 }
 0x125   : > { %v663_v18 = vmax.f32 %v600_v50, 0.0  ;;  %v688_v21 = vpack.c.bf16 %v662_v14, %v660_v52  ;;  %v604_v53 = vadd.f32 %v603_v15, %v2637_v17 }
 0x126   : > { %v605_v19 = vpop.f32.mrf.mxu0 }
 0x127   : > { %v689_v20 = vpack.c.bf16 %v663_v18, %v661_v51  ;;  %1890 = vmatpush1.bf16.msra.mxu1 %v2514_v55  ;;  %v606_v23 = vadd.f32 %v605_v19, %v2634_v16 }
 0x128   : > { %v607_v22 = vpop.f32.mrf.mxu0  ;;  %1875 = vmatprep.subr.bf16.mxu1 %v2520_v56  ;;  %v664_v56 = vmax.f32 %v604_v53, 0.0 }
 0x129   : > { %v608_v24 = vadd.f32 %v607_v22, %v2637_v17  ;;  %956 = vmatprep.mubr.bf16.mxu1 %v689_v20  ;;  %v665_v55 = vmax.f32 %v606_v23, 0.0 }
 0x12a   : > { %v609_v25 = vpop.f32.mrf.mxu0  ;;  %957 = vmatmul.mubr.bf16.gmra.mxu1 %v688_v21 }
 0x12b   : > { %v610_v54 = vadd.f32 %v609_v25, %v2634_v16  ;;  %1891 = vmatpush1.bf16.msra.mxu1 %v2526_v57  ;;  %v666_v26 = vmax.f32 %v608_v24, 0.0 }
 0x12c   : > { %v613_v27 = vpop.f32.mrf.mxu0  ;;  %1876 = vmatprep.subr.bf16.mxu1 %v2532_v58 }
 0x12d   : > { %v667_v28 = vmax.f32 %v610_v54, 0.0  ;;  %v690_v31 = vpack.c.bf16 %v666_v26, %v664_v56  ;;  %v614_v57 = vadd.f32 %v613_v27, %v2637_v17  ;;  %v2054_v56 = vld [vmem:[%s3085_s5 + $0x84] ss:$8 sps:$4 sm:$0xff]  }
 0x12e   : > { %v615_v29 = vpop.f32.mrf.mxu0 }
 0x12f   : > { %v691_v30 = vpack.c.bf16 %v667_v28, %v665_v55  ;;  %1892 = vmatpush1.bf16.msra.mxu1 %v2538_v59  ;;  %v616_v33 = vadd.f32 %v615_v29, %v2634_v16  ;;  %v2052_v29 = vld [vmem:[%s3085_s5 + $0x80] ss:$8 sps:$4 sm:$0xff]  }
 0x130   : > { %v617_v32 = vpop.f32.mrf.mxu0  ;;  %1877 = vmatprep.subr.bf16.mxu1 %v2544_v60  ;;  %v668_v60 = vmax.f32 %v614_v57, 0.0 }
 0x131   : > { %v618_v34 = vadd.f32 %v617_v32, %v2637_v17  ;;  %966 = vmatprep.mubr.bf16.mxu1 %v691_v30  ;;  %v669_v59 = vmax.f32 %v616_v33, 0.0  ;;  %v732_v30 = vld [vmem:[%s3084_s4] sm:$0x3] }
 0x132   : > { %v619_v35 = vpop.f32.mrf.mxu0  ;;  %967 = vmatmul.mubr.bf16.gmra.mxu1 %v690_v31  ;;  %v2718_v32 = vrot.slane %v732_v30, %v2626_v12  ;;  %v2721_v33 = vrot.slane %v732_v30, %v2628_v13 }
 0x133   : > { %v620_v58 = vadd.f32 %v619_v35, %v2634_v16  ;;  %1893 = vmatpush1.bf16.msra.mxu1 %v2550_v61  ;;  %v670_v36 = vmax.f32 %v618_v34, 0.0 }
 0x134   : > { %v623_v37 = vpop.f32.mrf.mxu0  ;;  %1878 = vmatprep.subr.bf16.mxu1 %v2556_v62 }
 0x135   : > { %v671_v38 = vmax.f32 %v620_v58, 0.0  ;;  %v692_v41 = vpack.c.bf16 %v670_v36, %v668_v60  ;;  %v624_v61 = vadd.f32 %v623_v37, %v2637_v17 }
 0x136   : > { %v625_v39 = vpop.f32.mrf.mxu0 }
 0x137   : > { %v693_v40 = vpack.c.bf16 %v671_v38, %v669_v59  ;;  %1894 = vmatpush1.bf16.msra.mxu1 %v2562_v63  ;;  %v626_v43 = vadd.f32 %v625_v39, %v2634_v16 }
 0x138   : > { %v627_v42 = vpop.f32.mrf.mxu0  ;;  %1879 = vmatprep.subr.bf16.mxu1 %v2568_v0  ;;  %v672_v0 = vmax.f32 %v624_v61, 0.0 }
 0x139   : > { %v628_v44 = vadd.f32 %v627_v42, %v2637_v17  ;;  %976 = vmatprep.mubr.bf16.mxu1 %v693_v40  ;;  %v673_v63 = vmax.f32 %v626_v43, 0.0 }
 0x13a   : > { %v629_v45 = vpop.f32.mrf.mxu0  ;;  %977 = vmatmul.mubr.bf16.gmra.mxu1 %v692_v41 }
 0x13b   : > { %v630_v62 = vadd.f32 %v629_v45, %v2634_v16  ;;  %1895 = vmatpush2.bf16.msra.mxu1 %v2574_v1  ;;  %v674_v46 = vmax.f32 %v628_v44, 0.0 }
 0x13c   : > { %v633_v47 = vpop.f32.mrf.mxu0  ;;  %1880 = vmatprep.subr.bf16.mxu1 %v2580_v2 }
 0x13d   : > { %v675_v49 = vmax.f32 %v630_v62, 0.0  ;;  %v694_v11 = vpack.c.bf16 %v674_v46, %v672_v0  ;;  %v634_v1 = vadd.f32 %v633_v47, %v2637_v17 }
 0x13e   : > { %v635_v10 = vpop.f32.mrf.mxu0 }
 0x13f   : > { %v695_v48 = vpack.c.bf16 %v675_v49, %v673_v63  ;;  %1896 = vmatpush2.bf16.msra.mxu1 %v2586_v3  ;;  %v636_v14 = vadd.f32 %v635_v10, %v2634_v16 }
 0x140   : > { %v637_v50 = vpop.f32.mrf.mxu0  ;;  %1881 = vmatprep.subr.bf16.mxu1 %v2592_v4  ;;  %v676_v4 = vmax.f32 %v634_v1, 0.0 }
 0x141   : > { %v638_v15 = vadd.f32 %v637_v50, %v2637_v17  ;;  %986 = vmatprep.mubr.bf16.mxu1 %v695_v48  ;;  %v677_v3 = vmax.f32 %v636_v14, 0.0 }
 0x142   : > { %v639_v51 = vpop.f32.mrf.mxu0  ;;  %987 = vmatmul.mubr.bf16.gmra.mxu1 %v694_v11 }
 0x143   : > { %v640_v2 = vadd.f32 %v639_v51, %v2634_v16  ;;  %1897 = vmatpush2.bf16.msra.mxu1 %v2598_v5  ;;  %v678_v18 = vmax.f32 %v638_v15, 0.0 }
 0x144   : > { %v643_v52 = vpop.f32.mrf.mxu0  ;;  %1882 = vmatprep.subr.bf16.mxu1 %v2604_v6 }
 0x145   : > { %v679_v19 = vmax.f32 %v640_v2, 0.0  ;;  %v696_v22 = vpack.c.bf16 %v678_v18, %v676_v4  ;;  %v644_v5 = vadd.f32 %v643_v52, %v2637_v17 }
 0x146   : > { %v645_v20 = vpop.f32.mrf.mxu0 }
 0x147   : > { %v697_v21 = vpack.c.bf16 %v679_v19, %v677_v3  ;;  %1898 = vmatpush2.bf16.msra.mxu1 %v2610_v7  ;;  %v646_v24 = vadd.f32 %v645_v20, %v2634_v16  ;;  %v680_v27 = vmax.f32 %v644_v5, 0.0 }
 0x148   : > { %v647_v23 = vpop.f32.mrf.mxu0  ;;  %1883 = vmatprep.subr.bf16.mxu1 %v2616_v8  ;;  %v2048_v8 = vld [vmem:[%s3085_s5 + $0xa4] ss:$8 sps:$4 sm:$0xff]  }
 0x149   : > { %v648_v53 = vadd.f32 %v647_v23, %v2637_v17  ;;  %996 = vmatprep.mubr.bf16.mxu1 %v697_v21  ;;  %v681_v26 = vmax.f32 %v646_v24, 0.0  ;;  %v2046_v17 = vld [vmem:[%s3085_s5 + $0xa0] ss:$8 sps:$4 sm:$0xff]   ;;  %1295 = vmatprep.subr.bf16.mxu0 %v2048_v8 }
 0x14a   : > { %v649_v25 = vpop.f32.mrf.mxu0  ;;  %997 = vmatmul.mubr.bf16.gmra.mxu1 %v696_v22  ;;  %1296 = vmatpush2.bf16.msra.mxu0 %v2046_v17 }
 0x14b   : > { %v650_v6 = vadd.f32 %v649_v25, %v2634_v16  ;;  %1899 = vmatpush2.bf16.msra.mxu1 %v2622_v9  ;;  %v682_v54 = vmax.f32 %v648_v53, 0.0  ;;  %v2051_v9 = vld [vmem:[%s3085_s5 + $0x94] ss:$8 sps:$4 sm:$0xff]   ;;  %v2049_v16 = vld [vmem:[%s3085_s5 + $0x90] ss:$8 sps:$4 sm:$0xff]  }
 0x14c   : > { %1884 = vmatprep.subr.bf16.mxu1 %v2048_v8  ;;  %1297 = vmatprep.subr.bf16.mxu0 %v2051_v9 }
 0x14d   : > { %v683_v7 = vmax.f32 %v650_v6, 0.0  ;;  %v698_v28 = vpack.c.bf16 %v682_v54, %v680_v27 }
 0x14e   : > { %1298 = vmatpush2.bf16.msra.mxu0 %v2049_v16 }
 0x14f   : > { %v699_v55 = vpack.c.bf16 %v683_v7, %v681_v26  ;;  %1900 = vmatpush2.bf16.msra.mxu1 %v2046_v17  ;;  %1299 = vmatprep.subr.bf16.mxu0 %v2054_v56 }
 0x150   : > { %1885 = vmatprep.subr.bf16.mxu1 %v2051_v9 }
 0x151   : > { %1006 = vmatprep.mubr.bf16.mxu1 %v699_v55 }
 0x152   : > { %1007 = vmatmul.mubr.bf16.gmra.mxu1 %v698_v28  ;;  %1300 = vmatpush2.bf16.msra.mxu0 %v2052_v29 }
 0x153   : > { %1901 = vmatpush2.bf16.msra.mxu1 %v2049_v16 }
 0x154   : > { %1886 = vmatprep.subr.bf16.mxu1 %v2054_v56 }
 0x157   : > { %1902 = vmatpush2.bf16.msra.mxu1 %v2052_v29 }
 0x1da   : > { %v938_v31 = vpop.f32.mrf.mxu1 }
 0x1db   : > { %v939_v36 = vadd.f32 %v938_v31, %v2721_v33 }
 0x1dc   : > { %v940_v34 = vpop.f32.mrf.mxu1 }
 0x1dd   : > { %v941_v35 = vadd.f32 %v940_v34, %v2718_v32  ;;  %v1017_v41 = vmax.f32 %v939_v36, 0.0 }
 0x1de   : > { %v942_v57 = vpop.f32.mrf.mxu1 }
 0x1df   : > { %v943_v58 = vadd.f32 %v942_v57, %v2721_v33  ;;  %v1018_v39 = vmax.f32 %v941_v35, 0.0 }
 0x1e0   : > { %v944_v37 = vpop.f32.mrf.mxu1 }
 0x1e1   : > { %v945_v59 = vadd.f32 %v944_v37, %v2718_v32  ;;  %v1019_v38 = vmax.f32 %v943_v58, 0.0 }
 0x1e2   : > { %v948_v60 = vpop.f32.mrf.mxu1 }
 0x1e3   : > { %v1020_v40 = vmax.f32 %v945_v59, 0.0  ;;  %v1049_v44 = vpack.c.bf16 %v1019_v38, %v1017_v41  ;;  %v949_v46 = vadd.f32 %v948_v60, %v2721_v33 }
 0x1e4   : > { %v950_v42 = vpop.f32.mrf.mxu1 }
 0x1e5   : > { %v1050_v43 = vpack.c.bf16 %v1020_v40, %v1018_v39  ;;  %v951_v45 = vadd.f32 %v950_v42, %v2718_v32  ;;  %v1021_v11 = vmax.f32 %v949_v46, 0.0 }
 0x1e6   : > { %v952_v61 = vpop.f32.mrf.mxu1 }
 0x1e7   : > { %v953_v62 = vadd.f32 %v952_v61, %v2721_v33  ;;  %1301 = vmatprep.mubr.bf16.mxu0 %v1050_v43  ;;  %v1022_v10 = vmax.f32 %v951_v45, 0.0 }
 0x1e8   : > { %v954_v47 = vpop.f32.mrf.mxu1  ;;  %1302 = vmatmul.mubr.bf16.vlgmr.msra.gmra.mxu0 %v1049_v44 }
 0x1e9   : > { %v955_v63 = vadd.f32 %v954_v47, %v2718_v32  ;;  %v1023_v49 = vmax.f32 %v953_v62, 0.0 }
 0x1ea   : > { %v958_v0 = vpop.f32.mrf.mxu1 }
 0x1eb   : > { %v1024_v48 = vmax.f32 %v955_v63, 0.0  ;;  %v1051_v15 = vpack.c.bf16 %v1023_v49, %v1021_v11  ;;  %v959_v18 = vadd.f32 %v958_v0, %v2721_v33 }
 0x1ec   : > { %v960_v50 = vpop.f32.mrf.mxu1 }
 0x1ed   : > { %v1052_v14 = vpack.c.bf16 %v1024_v48, %v1022_v10  ;;  %v961_v51 = vadd.f32 %v960_v50, %v2718_v32  ;;  %v1025_v22 = vmax.f32 %v959_v18, 0.0 }
 0x1ee   : > { %v962_v1 = vpop.f32.mrf.mxu1 }
 0x1ef   : > { %v963_v2 = vadd.f32 %v962_v1, %v2721_v33  ;;  %1311 = vmatprep.mubr.bf16.mxu0 %v1052_v14  ;;  %v1026_v20 = vmax.f32 %v961_v51, 0.0 }
 0x1f0   : > { %v964_v52 = vpop.f32.mrf.mxu1  ;;  %1312 = vmatmul.mubr.bf16.gmra.mxu0 %v1051_v15 }
 0x1f1   : > { %v965_v3 = vadd.f32 %v964_v52, %v2718_v32  ;;  %v1027_v19 = vmax.f32 %v963_v2, 0.0 }
 0x1f2   : > { %v968_v4 = vpop.f32.mrf.mxu1 }
 0x1f3   : > { %v1028_v21 = vmax.f32 %v965_v3, 0.0  ;;  %v1053_v53 = vpack.c.bf16 %v1027_v19, %v1025_v22  ;;  %v969_v54 = vadd.f32 %v968_v4, %v2721_v33 }
 0x1f4   : > { %v970_v23 = vpop.f32.mrf.mxu1 }
 0x1f5   : > { %v1054_v24 = vpack.c.bf16 %v1028_v21, %v1026_v20  ;;  %v971_v25 = vadd.f32 %v970_v23, %v2718_v32  ;;  %v1029_v17 = vmax.f32 %v969_v54, 0.0 }
 0x1f6   : > { %v972_v5 = vpop.f32.mrf.mxu1 }
 0x1f7   : > { %v973_v6 = vadd.f32 %v972_v5, %v2721_v33  ;;  %1321 = vmatprep.mubr.bf16.mxu0 %v1054_v24  ;;  %v1030_v28 = vmax.f32 %v971_v25, 0.0 }
 0x1f8   : > { %v974_v26 = vpop.f32.mrf.mxu1  ;;  %1322 = vmatmul.mubr.bf16.gmra.mxu0 %v1053_v53 }
 0x1f9   : > { %v975_v7 = vadd.f32 %v974_v26, %v2718_v32  ;;  %v1031_v27 = vmax.f32 %v973_v6, 0.0 }
 0x1fa   : > { %v978_v55 = vpop.f32.mrf.mxu1 }
 0x1fb   : > { %v1032_v8 = vmax.f32 %v975_v7, 0.0  ;;  %v1055_v56 = vpack.c.bf16 %v1031_v27, %v1029_v17  ;;  %v979_v34 = vadd.f32 %v978_v55, %v2721_v33 }
 0x1fc   : > { %v980_v9 = vpop.f32.mrf.mxu1 }
 0x1fd   : > { %v1056_v16 = vpack.c.bf16 %v1032_v8, %v1030_v28  ;;  %v981_v30 = vadd.f32 %v980_v9, %v2718_v32  ;;  %v1033_v38 = vmax.f32 %v979_v34, 0.0  ;;  %v1097_v28 = vld [vmem:[%s3086_s6] sm:$0x3] }
 0x1fe   : > { %v982_v29 = vpop.f32.mrf.mxu1  ;;  %v2759_v8 = vrot.slane %v1097_v28, %v2628_v13 }
 0x1ff   : > { %v983_v31 = vadd.f32 %v982_v29, %v2721_v33  ;;  %1331 = vmatprep.mubr.bf16.mxu0 %v1056_v16  ;;  %v1034_v37 = vmax.f32 %v981_v30, 0.0 }
 0x200   : > { %v984_v57 = vpop.f32.mrf.mxu1  ;;  %1332 = vmatmul.mubr.bf16.gmra.mxu0 %v1055_v56 }
 0x201   : > { %v985_v35 = vadd.f32 %v984_v57, %v2718_v32  ;;  %v1035_v58 = vmax.f32 %v983_v31, 0.0 }
 0x202   : > { %v988_v36 = vpop.f32.mrf.mxu1 }
 0x203   : > { %v1036_v59 = vmax.f32 %v985_v35, 0.0  ;;  %v1057_v40 = vpack.c.bf16 %v1035_v58, %v1033_v38  ;;  %v989_v44 = vadd.f32 %v988_v36, %v2721_v33 }
 0x204   : > { %v990_v60 = vpop.f32.mrf.mxu1 }
 0x205   : > { %v1058_v39 = vpack.c.bf16 %v1036_v59, %v1034_v37  ;;  %v991_v42 = vadd.f32 %v990_v60, %v2718_v32  ;;  %v1037_v49 = vmax.f32 %v989_v44, 0.0 }
 0x206   : > { %v992_v41 = vpop.f32.mrf.mxu1 }
 0x207   : > { %v993_v43 = vadd.f32 %v992_v41, %v2721_v33  ;;  %1341 = vmatprep.mubr.bf16.mxu1 %v1058_v39  ;;  %v1038_v47 = vmax.f32 %v991_v42, 0.0 }
 0x208   : > { %v994_v61 = vpop.f32.mrf.mxu1  ;;  %1342 = vmatmul.mubr.bf16.vlgmr.msra.gmra.mxu1 %v1057_v40 }
 0x209   : > { %v995_v45 = vadd.f32 %v994_v61, %v2718_v32  ;;  %v1039_v62 = vmax.f32 %v993_v43, 0.0 }
 0x20a   : > { %v998_v46 = vpop.f32.mrf.mxu1 }
 0x20b   : > { %v1040_v63 = vmax.f32 %v995_v45, 0.0  ;;  %v1059_v48 = vpack.c.bf16 %v1039_v62, %v1037_v49  ;;  %v999_v15 = vadd.f32 %v998_v46, %v2721_v33 }
 0x20c   : > { %v1000_v0 = vpop.f32.mrf.mxu1 }
 0x20d   : > { %v1060_v10 = vpack.c.bf16 %v1040_v63, %v1038_v47  ;;  %v1001_v50 = vadd.f32 %v1000_v0, %v2718_v32  ;;  %v1041_v19 = vmax.f32 %v999_v15, 0.0 }
 0x20e   : > { %v1002_v11 = vpop.f32.mrf.mxu1 }
 0x20f   : > { %v1003_v14 = vadd.f32 %v1002_v11, %v2721_v33  ;;  %1351 = vmatprep.mubr.bf16.mxu1 %v1060_v10  ;;  %v1042_v52 = vmax.f32 %v1001_v50, 0.0 }
 0x210   : > { %v1004_v1 = vpop.f32.mrf.mxu1  ;;  %1352 = vmatmul.mubr.bf16.gmra.mxu1 %v1059_v48 }
 0x211   : > { %v1005_v51 = vadd.f32 %v1004_v1, %v2718_v32  ;;  %v1043_v2 = vmax.f32 %v1003_v14, 0.0 }
 0x212   : > { %v1008_v18 = vpop.f32.mrf.mxu1 }
 0x213   : > { %v1044_v3 = vmax.f32 %v1005_v51, 0.0  ;;  %v1061_v21 = vpack.c.bf16 %v1043_v2, %v1041_v19  ;;  %v1009_v53 = vadd.f32 %v1008_v18, %v2721_v33 }
 0x214   : > { %v1010_v4 = vpop.f32.mrf.mxu1 }
 0x215   : > { %v1062_v20 = vpack.c.bf16 %v1044_v3, %v1042_v52  ;;  %v1011_v23 = vadd.f32 %v1010_v4, %v2718_v32  ;;  %v1045_v7 = vmax.f32 %v1009_v53, 0.0 }
 0x216   : > { %v1012_v22 = vpop.f32.mrf.mxu1 }
 0x217   : > { %v1013_v24 = vadd.f32 %v1012_v22, %v2721_v33  ;;  %1361 = vmatprep.mubr.bf16.mxu1 %v1062_v20  ;;  %v1046_v54 = vmax.f32 %v1011_v23, 0.0  ;;  %v2762_v33 = vrot.slane %v1097_v28, %v2626_v12 }
 0x218   : > { %v1014_v5 = vpop.f32.mrf.mxu1  ;;  %1362 = vmatmul.mubr.bf16.gmra.mxu1 %v1061_v21 }
 0x219   : > { %v1015_v25 = vadd.f32 %v1014_v5, %v2718_v32  ;;  %v1047_v6 = vmax.f32 %v1013_v24, 0.0 }
 0x21b   : > { %v1048_v26 = vmax.f32 %v1015_v25, 0.0  ;;  %v1063_v55 = vpack.c.bf16 %v1047_v6, %v1045_v7 }
 0x21d   : > { %v1064_v27 = vpack.c.bf16 %v1048_v26, %v1046_v54 }
 0x21f   : > { %1371 = vmatprep.mubr.bf16.mxu1 %v1064_v27 }
 0x220   : > { %1372 = vmatmul.mubr.bf16.gmra.mxu1 %v1063_v55 }
 0x2a8   : > { %v1303_v17 = vpop.f32.mrf.mxu0 }
 0x2a9   : > { %v2765_v32 = vadd.f32 %v1303_v17, %v2759_v8 }
 0x2aa   : > { %v1305_v9 = vpop.f32.mrf.mxu0 }
 0x2ab   : > { %v1382_v16 = vand.u32 2147483647, %v2765_v32  ;;  %v2769_v56 = vadd.f32 %v1305_v9, %v2762_v33  ;;  %vm1574_vm0 = vcmp.ge.f32.partialorder %v2765_v32, 0.0 }
 0x2ac   : > { %v1307_v29 = vpop.f32.mrf.mxu0 }
 0x2ad   : > { %v1414_v30 = vsub.f32 0.0, %v1382_v16  ;;  %v1383_v31 = vand.u32 2147483647, %v2769_v56  ;;  %v2773_v13 = vadd.f32 %v1307_v29, %v2759_v8  ;;  %vm1575_vm1 = vcmp.ge.f32.partialorder %v2769_v56, 0.0 }
 0x2ae   : > { %v1309_v34 = vpop.f32.mrf.mxu0 }
 0x2af   : > { %v1446_v12 = vmul.f32 1.442695, %v1414_v30  ;;  %v1415_v57 = vsub.f32 0.0, %v1383_v31  ;;  %v1384_v35 = vand.u32 2147483647, %v2773_v13  ;;  %v2777_v58 = vadd.f32 %v1309_v34, %v2762_v33 }
 0x2b0   : > { %v1313_v36 = vpop.f32.mrf.mxu0  ;;  %vm1576_vm2 = vcmp.ge.f32.partialorder %v2773_v13, 0.0 }
 0x2b1   : > { %2055 = vpow2.f32 %v1446_v12  ;;  %v1448_v37 = vmul.f32 1.442695, %v1415_v57  ;;  %v1416_v59 = vsub.f32 0.0, %v1384_v35  ;;  %v2780_v38 = vadd.f32 %v1313_v36, %v2759_v8 }
 0x2b2   : > { %v1385_v60 = vand.u32 2147483647, %v2777_v58  ;;  %v1315_v39 = vpop.f32.mrf.mxu0  ;;  %vm1577_vm3 = vcmp.ge.f32.partialorder %v2777_v58, 0.0 }
 0x2b3   : > { %2057 = vpow2.f32 %v1448_v37  ;;  %v1450_v40 = vmul.f32 1.442695, %v1416_v59  ;;  %v1386_v41 = vand.u32 2147483647, %v2780_v38  ;;  %v2785_v43 = vadd.f32 %v1315_v39, %v2762_v33 }
 0x2b4   : > { %v1417_v42 = vsub.f32 0.0, %v1385_v60  ;;  %v1317_v44 = vpop.f32.mrf.mxu0  ;;  %vm1578_vm4 = vcmp.ge.f32.partialorder %v2780_v38, 0.0 }
 0x2b5   : > { %2059 = vpow2.f32 %v1450_v40  ;;  %v1418_v61 = vsub.f32 0.0, %v1386_v41  ;;  %v2788_v45 = vadd.f32 %v1317_v44, %v2759_v8  ;;  %v1387_v46 = vand.u32 2147483647, %v2785_v43 }
 0x2b6   : > { %v1452_v62 = vmul.f32 1.442695, %v1417_v42  ;;  %v1319_v47 = vpop.f32.mrf.mxu0  ;;  %vm1579_vm5 = vcmp.ge.f32.partialorder %v2785_v43, 0.0 }
 0x2b7   : > { %v1454_v63 = vmul.f32 1.442695, %v1418_v61  ;;  %v1388_v49 = vand.u32 2147483647, %v2788_v45  ;;  %v2793_v0 = vadd.f32 %v1319_v47, %v2762_v33  ;;  %v1419_v10 = vsub.f32 0.0, %v1387_v46 }
 0x2b8   : > { %2061 = vpow2.f32 %v1452_v62  ;;  %v1323_v48 = vpop.f32.mrf.mxu0  ;;  %vm1580_vm6 = vcmp.ge.f32.partialorder %v2788_v45, 0.0 }
 0x2b9   : > { %2063 = vpow2.f32 %v1454_v63  ;;  %v1420_v11 = vsub.f32 0.0, %v1388_v49  ;;  %v1389_v50 = vand.u32 2147483647, %v2793_v0  ;;  %v1456_v14 = vmul.f32 1.442695, %v1419_v10 }
 0x2ba   : > { %v2797_v15 = vadd.f32 %v1323_v48, %v2759_v8  ;;  %v1325_v1 = vpop.f32.mrf.mxu0  ;;  %vm1581_vm7 = vcmp.ge.f32.partialorder %v2793_v0, 0.0 }
 0x2bb   : > { %v1458_v51 = vmul.f32 1.442695, %v1420_v11  ;;  %v1421_v2 = vsub.f32 0.0, %v1389_v50  ;;  %v2800_v18 = vadd.f32 %v1325_v1, %v2762_v33  ;;  %2065 = vpow2.f32 %v1456_v14 }
 0x2bc   : > { %v1390_v52 = vand.u32 2147483647, %v2797_v15  ;;  %v1327_v3 = vpop.f32.mrf.mxu0  ;;  %vm1582_vm8 = vcmp.ge.f32.partialorder %v2797_v15, 0.0 }
 0x2bd   : > { %2067 = vpow2.f32 %v1458_v51  ;;  %v1460_v19 = vmul.f32 1.442695, %v1421_v2  ;;  %v1391_v4 = vand.u32 2147483647, %v2800_v18  ;;  %v2807_v22 = vadd.f32 %v1327_v3, %v2759_v8 }
 0x2be   : > { %v2804_v20 = vpop.eup %2055  ;;  %v1422_v21 = vsub.f32 0.0, %v1390_v52  ;;  %v1329_v23 = vpop.f32.mrf.mxu0  ;;  %vm1583_vm9 = vcmp.ge.f32.partialorder %v2800_v18, 0.0 }
 0x2bf   : > { %v1510_v24 = vadd.f32 1.0, %v2804_v20  ;;  %2069 = vpow2.f32 %v1460_v19  ;;  %v1423_v53 = vsub.f32 0.0, %v1391_v4  ;;  %v2811_v5 = vadd.f32 %v1329_v23, %v2762_v33 }
 0x2c0   : > { %v2813_v25 = vpop.eup %2057  ;;  %v1462_v6 = vmul.f32 1.442695, %v1422_v21  ;;  %v1392_v54 = vand.u32 2147483647, %v2807_v22  ;;  %v1333_v26 = vpop.f32.mrf.mxu0  ;;  %vm1584_vm10 = vcmp.ge.f32.partialorder %v2807_v22, 0.0 }
 0x2c1   : > { %2071 = vrcp.f32 %v1510_v24  ;;  %v1511_v7 = vadd.f32 1.0, %v2813_v25  ;;  %v1464_v27 = vmul.f32 1.442695, %v1423_v53  ;;  %v1393_v55 = vand.u32 2147483647, %v2811_v5 }
 0x2c2   : > { %v2818_v28 = vpop.eup %2059  ;;  %2073 = vpow2.f32 %v1462_v6  ;;  %v1424_v17 = vsub.f32 0.0, %v1392_v54  ;;  %v2821_v9 = vadd.f32 %v1333_v26, %v2759_v8  ;;  %v1335_v16 = vpop.f32.mrf.mxu0  ;;  %vm1585_vm11 = vcmp.ge.f32.partialorder %v2811_v5, 0.0 }
 0x2c3   : > { %2075 = vrcp.f32 %v1511_v7  ;;  %v1512_v29 = vadd.f32 1.0, %v2818_v28  ;;  %v1425_v30 = vsub.f32 0.0, %v1393_v55  ;;  %v2825_v31 = vadd.f32 %v1335_v16, %v2762_v33 }
 0x2c4   : > { %2077 = vpow2.f32 %v1464_v27  ;;  %v1466_v34 = vmul.f32 1.442695, %v1424_v17  ;;  %v1394_v12 = vand.u32 2147483647, %v2821_v9  ;;  %v1337_v57 = vpop.f32.mrf.mxu0  ;;  %vm1586_vm12 = vcmp.ge.f32.partialorder %v2821_v9, 0.0 }
 0x2c5   : > { %v2828_v35 = vpop.eup %2061  ;;  %2079 = vrcp.f32 %v1512_v29  ;;  %v1468_v36 = vmul.f32 1.442695, %v1425_v30  ;;  %v1395_v37 = vand.u32 2147483647, %v2825_v31  ;;  %v2835_v40 = vadd.f32 %v1337_v57, %v2759_v8 }
 0x2c6   : > { %v2831_v59 = vpop.eup %2063  ;;  %v1513_v60 = vadd.f32 1.0, %v2828_v35  ;;  %2081 = vpow2.f32 %v1466_v34  ;;  %v1426_v39 = vsub.f32 0.0, %v1394_v12  ;;  %v1339_v41 = vpop.f32.mrf.mxu0  ;;  %vm1587_vm13 = vcmp.ge.f32.partialorder %v2825_v31, 0.0 }
 0x2c7   : > { %v1514_v42 = vadd.f32 1.0, %v2831_v59  ;;  %2083 = vpow2.f32 %v1468_v36  ;;  %v1427_v44 = vsub.f32 0.0, %v1395_v37  ;;  %v2839_v61 = vadd.f32 %v1339_v41, %v2762_v33 }
 0x2c8   : > { %2085 = vrcp.f32 %v1513_v60  ;;  %v1470_v62 = vmul.f32 1.442695, %v1426_v39  ;;  %v1396_v46 = vand.u32 2147483647, %v2835_v40  ;;  %v1343_v47 = vpop.f32.mrf.mxu1  ;;  %v2842_v63 = vpop.eup %2065  ;;  %vm1588_vm14 = vcmp.ge.f32.partialorder %v2835_v40, 0.0 }
 0x2c9   : > { %2087 = vrcp.f32 %v1514_v42  ;;  %v1472_v49 = vmul.f32 1.442695, %v1427_v44  ;;  %v1397_v10 = vand.u32 2147483647, %v2839_v61  ;;  %v1515_v11 = vadd.f32 1.0, %v2842_v63 }
 0x2ca   : > { %v2846_v48 = vpop.eup %2067  ;;  %2089 = vpow2.f32 %v1470_v62  ;;  %v1428_v50 = vsub.f32 0.0, %v1396_v46  ;;  %v2850_v14 = vadd.f32 %v1343_v47, %v2759_v8  ;;  %v1345_v1 = vpop.f32.mrf.mxu1  ;;  %vm1589_vm15 = vcmp.ge.f32.partialorder %v2839_v61, 0.0 }
 0x2cb   : > { %v1516_v51 = vadd.f32 1.0, %v2846_v48  ;;  %2091 = vpow2.f32 %v1472_v49  ;;  %v1429_v2 = vsub.f32 0.0, %v1397_v10  ;;  %v2854_v52 = vadd.f32 %v1345_v1, %v2762_v33 }
 0x2cc   : > { %v2856_v3 = vpop.eup %2069  ;;  %2093 = vrcp.f32 %v1515_v11  ;;  %v1474_v19 = vmul.f32 1.442695, %v1428_v50  ;;  %v1398_v4 = vand.u32 2147483647, %v2850_v14  ;;  %v1347_v21 = vpop.f32.mrf.mxu1 }
 0x2cd   : > { %2095 = vrcp.f32 %v1516_v51  ;;  %v1517_v23 = vadd.f32 1.0, %v2856_v3  ;;  %v1476_v24 = vmul.f32 1.442695, %v1429_v2  ;;  %v1399_v53 = vand.u32 2147483647, %v2854_v52 }
 0x2ce   : > { %v2072_v6 = vpop.eup %2071  ;;  %2097 = vpow2.f32 %v1474_v19  ;;  %v1430_v54 = vsub.f32 0.0, %v1398_v4  ;;  %v2864_v26 = vadd.f32 %v1347_v21, %v2759_v8  ;;  %v1349_v7 = vpop.f32.mrf.mxu1 }
 0x2cf   : > { %v2866_v27 = vpop.eup %2073  ;;  %v1606_v55 = vmul.f32 %v2072_v6, %v2804_v20  ;;  %2099 = vrcp.f32 %v1517_v23  ;;  %v1431_v17 = vsub.f32 0.0, %v1399_v53  ;;  %v2878_v16 = vadd.f32 %v1349_v7, %v2762_v33 }
 0x2d0   : > { %v2076_v29 = vpop.eup %2075  ;;  %v1518_v30 = vadd.f32 1.0, %v2866_v27  ;;  %2101 = vpow2.f32 %v1476_v24  ;;  %v1478_v34 = vmul.f32 1.442695, %v1430_v54  ;;  %v1400_v12 = vand.u32 2147483647, %v2864_v26  ;;  %v1353_v57 = vpop.f32.mrf.mxu1 }
 0x2d1   : > { %v2882_v36 = vpop.eup %2077  ;;  %v1638_v20 = vsel %vm1574_vm0, %v2072_v6, %v1606_v55  ;;  %v1607_v37 = vmul.f32 %v2076_v29, %v2813_v25  ;;  %v1480_v60 = vmul.f32 1.442695, %v1431_v17  ;;  %v1401_v44 = vand.u32 2147483647, %v2878_v16 }
 0x2d2   : > { %v2080_v39 = vpop.eup %2079  ;;  %1670 = vst [vmem:[%s2873_s11] sm:$0xff] %v1638_v20  ;;  %2103 = vrcp.f32 %v1518_v30  ;;  %v1519_v41 = vadd.f32 1.0, %v2882_v36  ;;  %v1432_v42 = vsub.f32 0.0, %v1400_v12  ;;  %v1355_v62 = vpop.f32.mrf.mxu1  ;;  %vm1590_vm0 = vcmp.ge.f32.partialorder %v2850_v14, 0.0 }
 0x2d3   : > { %v2891_v46 = vpop.eup %2081  ;;  %v1639_v32 = vsel %vm1575_vm1, %v2076_v29, %v1607_v37  ;;  %v1608_v25 = vmul.f32 %v2080_v39, %v2818_v28  ;;  %2105 = vpow2.f32 %v1478_v34  ;;  %v1433_v11 = vsub.f32 0.0, %v1401_v44 }
 0x2d4   : > { %v2897_v47 = vpop.eup %2083  ;;  %1671 = vst [vmem:[%s2873_s11 + $0x8] sm:$0xff] %v1639_v32  ;;  %2107 = vrcp.f32 %v1519_v41  ;;  %v1520_v49 = vadd.f32 1.0, %v2891_v46  ;;  %v1482_v10 = vmul.f32 1.442695, %v1432_v42  ;;  %v1357_v50 = vpop.f32.mrf.mxu1  ;;  %v2905_v28 = vadd.f32 %v1353_v57, %v2759_v8 }
 0x2d5   : > { %v2086_v1 = vpop.eup %2085  ;;  %v1640_v56 = vsel %vm1576_vm2, %v2080_v39, %v1608_v25  ;;  %v1521_v51 = vadd.f32 1.0, %v2897_v47  ;;  %2109 = vpow2.f32 %v1480_v60  ;;  %v1484_v4 = vmul.f32 1.442695, %v1433_v11 }
 0x2d6   : > { %v2088_v2 = vpop.eup %2087  ;;  %1672 = vst [vmem:[%s2873_s11 + $0x10] sm:$0xff] %v1640_v56  ;;  %v1609_v19 = vmul.f32 %v2086_v1, %v2828_v35  ;;  %2111 = vrcp.f32 %v1520_v49  ;;  %v2910_v21 = vadd.f32 %v1355_v62, %v2762_v33  ;;  %v1359_v23 = vpop.f32.mrf.mxu1  ;;  %v1402_v53 = vand.u32 2147483647, %v2905_v28 }
 0x2d7   : > { %v2912_v24 = vpop.eup %2089  ;;  %v1610_v13 = vmul.f32 %v2088_v2, %v2831_v59  ;;  %2113 = vrcp.f32 %v1521_v51  ;;  %v2934_v60 = vadd.f32 %v1357_v50, %v2759_v8  ;;  %v2940_v44 = vadd.f32 %v1359_v23, %v2762_v33 }
 0x2d8   : > { %v2917_v6 = vpop.eup %2091  ;;  %v1641_v35 = vsel %vm1577_vm3, %v2086_v1, %v1609_v19  ;;  %v1522_v54 = vadd.f32 1.0, %v2912_v24  ;;  %2115 = vpow2.f32 %v1482_v10  ;;  %v1403_v7 = vand.u32 2147483647, %v2910_v21  ;;  %v1363_v55 = vpop.f32.mrf.mxu1 }
 0x2d9   : > { %v2094_v17 = vpop.eup %2093  ;;  %1673 = vst [vmem:[%s2873_s11 + $0x18] sm:$0xff] %v1641_v35  ;;  %v1642_v59 = vsel %vm1578_vm4, %v2088_v2, %v1610_v13  ;;  %v1523_v29 = vadd.f32 1.0, %v2917_v6  ;;  %2117 = vpow2.f32 %v1484_v4  ;;  %v1434_v30 = vsub.f32 0.0, %v1402_v53 }
 0x2da   : > { %v2096_v34 = vpop.eup %2095  ;;  %1674 = vst [vmem:[%s2873_s11 + $0x20] sm:$0xff] %v1642_v59  ;;  %v1611_v58 = vmul.f32 %v2094_v17, %v2842_v63  ;;  %2119 = vrcp.f32 %v1522_v54  ;;  %v1435_v12 = vsub.f32 0.0, %v1403_v7  ;;  %v1365_v57 = vpop.f32.mrf.mxu1  ;;  %v1404_v43 = vand.u32 2147483647, %v2934_v60 }
 0x2db   : > { %v2930_v20 = vpop.eup %2097  ;;  %v1612_v37 = vmul.f32 %v2096_v34, %v2846_v48  ;;  %2121 = vrcp.f32 %v1523_v29  ;;  %v1486_v38 = vmul.f32 1.442695, %v1434_v30  ;;  %v1405_v10 = vand.u32 2147483647, %v2940_v44 }
 0x2dc   : > { %v2100_v39 = vpop.eup %2099  ;;  %v1643_v63 = vsel %vm1579_vm5, %v2094_v17, %v1611_v58  ;;  %v1524_v41 = vadd.f32 1.0, %v2930_v20  ;;  %v1488_v42 = vmul.f32 1.442695, %v1435_v12  ;;  %v1367_v62 = vpop.f32.mrf.mxu1  ;;  %v2961_v2 = vadd.f32 %v1363_v55, %v2759_v8 }
 0x2dd   : > { %v2942_v32 = vpop.eup %2101  ;;  %1675 = vst [vmem:[%s2873_s11 + $0x28] sm:$0xff] %v1643_v63  ;;  %v1644_v48 = vsel %vm1580_vm6, %v2096_v34, %v1612_v37  ;;  %v1613_v25 = vmul.f32 %v2100_v39, %v2856_v3  ;;  %2123 = vpow2.f32 %v1486_v38  ;;  %v1436_v3 = vsub.f32 0.0, %v1404_v43 }
 0x2de   : > { %1676 = vst [vmem:[%s2873_s11 + $0x30] sm:$0xff] %v1644_v48  ;;  %2125 = vrcp.f32 %v1524_v41  ;;  %v1525_v49 = vadd.f32 1.0, %v2942_v32  ;;  %v1369_v11 = vpop.f32.mrf.mxu1  ;;  %v1437_v51 = vsub.f32 0.0, %v1405_v10  ;;  %v2966_v23 = vadd.f32 %v1365_v57, %v2762_v33 }
 0x2df   : > { %v2104_v50 = vpop.eup %2103  ;;  %v1645_v45 = vsel %vm1581_vm7, %v2100_v39, %v1613_v25  ;;  %2127 = vpow2.f32 %v1488_v42  ;;  %v1490_v4 = vmul.f32 1.442695, %v1436_v3  ;;  %v1406_v54 = vand.u32 2147483647, %v2961_v2 }
 0x2e0   : > { %v2956_v1 = vpop.eup %2105  ;;  %1677 = vst [vmem:[%s2873_s11 + $0x38] sm:$0xff] %v1645_v45  ;;  %v1614_v56 = vmul.f32 %v2104_v50, %v2866_v27  ;;  %2129 = vrcp.f32 %v1525_v49  ;;  %v1492_v35 = vmul.f32 1.442695, %v1437_v51  ;;  %v1373_v7 = vpop.f32.mrf.mxu1  ;;  %v1407_v59 = vand.u32 2147483647, %v2966_v23 }
 0x2e1   : > { %v2108_v19 = vpop.eup %2107  ;;  %v1526_v0 = vadd.f32 1.0, %v2956_v1  ;;  %v2978_v29 = vadd.f32 %v1367_v62, %v2759_v8  ;;  %v1438_v34 = vsub.f32 0.0, %v1406_v54  ;;  %v3000_v48 = vadd.f32 %v1369_v11, %v2762_v33 }
 0x2e2   : > { %v2968_v13 = vpop.eup %2109  ;;  %v1646_v27 = vsel %vm1582_vm8, %v2104_v50, %v1614_v56  ;;  %v1615_v53 = vmul.f32 %v2108_v19, %v2882_v36  ;;  %v1439_v57 = vsub.f32 0.0, %v1407_v59  ;;  %v1375_v39 = vpop.f32.mrf.mxu1  ;;  %v3004_v49 = vadd.f32 %v1373_v7, %v2759_v8 }
 0x2e3   : > { %v2112_v55 = vpop.eup %2111  ;;  %1678 = vst [vmem:[%s2873_s11 + $0x40] sm:$0xff] %v1646_v27  ;;  %2131 = vrcp.f32 %v1526_v0  ;;  %v1527_v17 = vadd.f32 1.0, %v2968_v13  ;;  %v1494_v38 = vmul.f32 1.442695, %v1438_v34  ;;  %v1409_v9 = vand.u32 2147483647, %v3000_v48 }
 0x2e4   : > { %v2114_v30 = vpop.eup %2113  ;;  %v1647_v15 = vsel %vm1583_vm9, %v2108_v19, %v1615_v53  ;;  %v1616_v36 = vmul.f32 %v2112_v55, %v2891_v46  ;;  %2133 = vpow2.f32 %v1490_v4  ;;  %v1496_v42 = vmul.f32 1.442695, %v1439_v57 }
 0x2e5   : > { %v2983_v58 = vpop.eup %2115  ;;  %1679 = vst [vmem:[%s2873_s11 + $0x48] sm:$0xff] %v1647_v15  ;;  %v1617_v12 = vmul.f32 %v2114_v30, %v2897_v47  ;;  %2135 = vrcp.f32 %v1527_v17  ;;  %v1408_v47 = vand.u32 2147483647, %v2978_v29  ;;  %v1441_v31 = vsub.f32 0.0, %v1409_v9 }
 0x2e6   : > { %v2988_v37 = vpop.eup %2117  ;;  %v1648_v18 = vsel %vm1584_vm10, %v2112_v55, %v1616_v36  ;;  %v1528_v46 = vadd.f32 1.0, %v2983_v58  ;;  %2137 = vpow2.f32 %v1492_v35  ;;  %v1410_v19 = vand.u32 2147483647, %v3004_v49 }
 0x2e7   : > { %v2120_v63 = vpop.eup %2119  ;;  %1680 = vst [vmem:[%s2873_s11 + $0x50] sm:$0xff] %v1648_v18  ;;  %v1649_v41 = vsel %vm1585_vm11, %v2114_v30, %v1617_v12  ;;  %v1529_v5 = vadd.f32 1.0, %v2988_v37  ;;  %v1440_v43 = vsub.f32 0.0, %v1408_v47  ;;  %v3020_v27 = vadd.f32 %v1375_v39, %v2762_v33 }
 0x2e8   : > { %v2122_v62 = vpop.eup %2121  ;;  %1681 = vst [vmem:[%s2873_s11 + $0x58] sm:$0xff] %v1649_v41  ;;  %v1618_v22 = vmul.f32 %v2120_v63, %v2912_v24  ;;  %2139 = vrcp.f32 %v1528_v46  ;;  %v1377_v24 = vpop.f32.mrf.mxu1  ;;  %v1500_v40 = vmul.f32 1.442695, %v1441_v31  ;;  %v1442_v7 = vsub.f32 0.0, %v1410_v19 }
 0x2e9   : > { %v1619_v25 = vmul.f32 %v2122_v62, %v2917_v6  ;;  %2141 = vrcp.f32 %v1529_v5  ;;  %v1498_v3 = vmul.f32 1.442695, %v1440_v43  ;;  %v3023_v53 = vadd.f32 %v1377_v24, %v2759_v8 }
 0x2ea   : > { %v3006_v10 = vpop.eup %2123  ;;  %v1650_v50 = vsel %vm1586_vm12, %v2120_v63, %v1618_v22  ;;  %2143 = vpow2.f32 %v1494_v38  ;;  %v1411_v55 = vand.u32 2147483647, %v3020_v27  ;;  %v1502_v15 = vmul.f32 1.442695, %v1442_v7 }
 0x2eb   : > { %v2126_v45 = vpop.eup %2125  ;;  %1682 = vst [vmem:[%s2873_s11 + $0x60] sm:$0xff] %v1650_v50  ;;  %v1651_v11 = vsel %vm1587_vm13, %v2122_v62, %v1619_v25  ;;  %v1530_v6 = vadd.f32 1.0, %v3006_v10  ;;  %2145 = vpow2.f32 %v1496_v42  ;;  %v1412_v8 = vand.u32 2147483647, %v3023_v53 }
 0x2ec   : > { %v3012_v56 = vpop.eup %2127  ;;  %1683 = vst [vmem:[%s2873_s11 + $0x68] sm:$0xff] %v1651_v11  ;;  %v1620_v51 = vmul.f32 %v2126_v45, %v2930_v20  ;;  %v1379_v20 = vpop.f32.mrf.mxu1  ;;  %v1443_v36 = vsub.f32 0.0, %v1411_v55  ;;  %vm1591_vm1 = vcmp.ge.f32.partialorder %v2854_v52, 0.0  ;;  %vm1592_vm2 = vcmp.ge.f32.partialorder %v2864_v26, 0.0 }
 0x2ed   : > { %v2130_v0 = vpop.eup %2129  ;;  %2147 = vrcp.f32 %v1530_v6  ;;  %v1531_v4 = vadd.f32 1.0, %v3012_v56  ;;  %v3035_v34 = vadd.f32 %v1379_v20, %v2762_v33  ;;  %v1444_v57 = vsub.f32 0.0, %v1412_v8 }
 0x2ee   : > { %v1652_v35 = vsel %vm1588_vm14, %v2126_v45, %v1620_v51  ;;  %v1621_v54 = vmul.f32 %v2130_v0, %v2942_v32  ;;  %2149 = vpow2.f32 %v1498_v3  ;;  %vm1593_vm3 = vcmp.ge.f32.partialorder %v2878_v16, 0.0 }
 0x2ef   : > { %1684 = vst [vmem:[%s2873_s11 + $0x70] sm:$0xff] %v1652_v35  ;;  %2151 = vrcp.f32 %v1531_v4  ;;  %v1506_v33 = vmul.f32 1.442695, %v1444_v57  ;;  %v1413_v63 = vand.u32 2147483647, %v3035_v34  ;;  %vm1594_vm4 = vcmp.ge.f32.partialorder %v2905_v28, 0.0 }
 0x2f0   : > { %v2132_v17 = vpop.eup %2131  ;;  %v1653_v59 = vsel %vm1589_vm15, %v2130_v0, %v1621_v54  ;;  %2153 = vpow2.f32 %v1500_v40  ;;  %vm1595_vm5 = vcmp.ge.f32.partialorder %v2910_v21, 0.0  ;;  %vm1596_vm6 = vcmp.ge.f32.partialorder %v2934_v60, 0.0 }
 0x2f1   : > { %v3030_v30 = vpop.eup %2133  ;;  %1685 = vst [vmem:[%s2873_s11 + $0x78] sm:$0xff] %v1653_v59  ;;  %v1622_v32 = vmul.f32 %v2132_v17, %v2956_v1  ;;  %2155 = vpow2.f32 %v1502_v15  ;;  %v1504_v1 = vmul.f32 1.442695, %v1443_v36  ;;  %v1445_v42 = vsub.f32 0.0, %v1413_v63 }
 0x2f2   : > { %v2136_v61 = vpop.eup %2135  ;;  %v1532_v12 = vadd.f32 1.0, %v3030_v30  ;;  %vm1597_vm7 = vcmp.ge.f32.partialorder %v2940_v44, 0.0  ;;  %vm1598_vm8 = vcmp.ge.f32.partialorder %v2961_v2, 0.0  ;;  %vm1599_vm9 = vcmp.ge.f32.partialorder %v2966_v23, 0.0 }
 0x2f3   : > { %v2138_v18 = vpop.eup %2137  ;;  %v1654_v46 = vsel %vm1590_vm0, %v2132_v17, %v1622_v32  ;;  %v1623_v38 = vmul.f32 %v2136_v61, %v2968_v13  ;;  %v1508_v43 = vmul.f32 1.442695, %v1445_v42  ;;  %vm1600_vm10 = vcmp.ge.f32.partialorder %v2978_v29, 0.0 }
 0x2f4   : > { %1686 = vst [vmem:[%s2873_s11 + $0x80] sm:$0xff] %v1654_v46  ;;  %2157 = vrcp.f32 %v1532_v12  ;;  %v1533_v39 = vadd.f32 1.0, %v2138_v18  ;;  %vm1601_vm11 = vcmp.ge.f32.partialorder %v3000_v48, 0.0  ;;  %vm1602_vm12 = vcmp.ge.f32.partialorder %v3004_v49, 0.0 }
 0x2f5   : > { %v2140_v41 = vpop.eup %2139  ;;  %v1655_v14 = vsel %vm1591_vm1, %v2136_v61, %v1623_v38  ;;  %2159 = vpow2.f32 %v1504_v1  ;;  %vm1603_vm13 = vcmp.ge.f32.partialorder %v3020_v27, 0.0  ;;  %vm1604_vm14 = vcmp.ge.f32.partialorder %v3023_v53, 0.0 }
 0x2f6   : > { %v2142_v52 = vpop.eup %2141  ;;  %1687 = vst [vmem:[%s2873_s11 + $0x88] sm:$0xff] %v1655_v14  ;;  %v1624_v5 = vmul.f32 %v2140_v41, %v2983_v58  ;;  %2161 = vrcp.f32 %v1533_v39  ;;  %vm1605_vm15 = vcmp.ge.f32.partialorder %v3035_v34, 0.0 }
 0x2f7   : > { %v2144_v13 = vpop.eup %2143  ;;  %v1625_v47 = vmul.f32 %v2142_v52, %v2988_v37  ;;  %2163 = vpow2.f32 %v1506_v33 }
 0x2f8   : > { %v2146_v62 = vpop.eup %2145  ;;  %v1656_v22 = vsel %vm1592_vm2, %v2140_v41, %v1624_v5  ;;  %v1534_v25 = vadd.f32 1.0, %v2144_v13 }
 0x2f9   : > { %1688 = vst [vmem:[%s2873_s11 + $0x90] sm:$0xff] %v1656_v22  ;;  %v1657_v50 = vsel %vm1593_vm3, %v2142_v52, %v1625_v47  ;;  %v1535_v9 = vadd.f32 1.0, %v2146_v62 }
 0x2fa   : > { %v2148_v58 = vpop.eup %2147  ;;  %1689 = vst [vmem:[%s2873_s11 + $0x98] sm:$0xff] %v1657_v50  ;;  %2165 = vrcp.f32 %v1534_v25 }
 0x2fb   : > { %v2150_v24 = vpop.eup %2149  ;;  %v1626_v26 = vmul.f32 %v2148_v58, %v3006_v10  ;;  %2167 = vrcp.f32 %v1535_v9 }
 0x2fc   : > { %v2152_v37 = vpop.eup %2151  ;;  %v1536_v45 = vadd.f32 1.0, %v2150_v24  ;;  %2169 = vpow2.f32 %v1508_v43 }
 0x2fd   : > { %v2154_v16 = vpop.eup %2153  ;;  %v1658_v11 = vsel %vm1594_vm4, %v2148_v58, %v1626_v26  ;;  %v1627_v6 = vmul.f32 %v2152_v37, %v3012_v56 }
 0x2fe   : > { %1690 = vst [vmem:[%s2873_s11 + $0xa0] sm:$0xff] %v1658_v11  ;;  %2171 = vrcp.f32 %v1536_v45  ;;  %v1537_v3 = vadd.f32 1.0, %v2154_v16  ;;  %v2156_v31 = vpop.eup %2155 }
 0x2ff   : > { %v1659_v51 = vsel %vm1595_vm5, %v2152_v37, %v1627_v6  ;;  %v1538_v19 = vadd.f32 1.0, %v2156_v31 }
 0x300   : > { %1691 = vst [vmem:[%s2873_s11 + $0xa8] sm:$0xff] %v1659_v51  ;;  %2173 = vrcp.f32 %v1537_v3 }
 0x301   : > { %v2158_v10 = vpop.eup %2157  ;;  %2175 = vrcp.f32 %v1538_v19 }
 0x302   : > { %v2160_v28 = vpop.eup %2159  ;;  %v1628_v0 = vmul.f32 %v2158_v10, %v3030_v30 }
 0x303   : > { %v2162_v4 = vpop.eup %2161  ;;  %v1539_v56 = vadd.f32 1.0, %v2160_v28 }
 0x304   : > { %v2164_v35 = vpop.eup %2163  ;;  %v1660_v21 = vsel %vm1596_vm6, %v2158_v10, %v1628_v0  ;;  %v1629_v54 = vmul.f32 %v2162_v4, %v2138_v18 }
 0x305   : > { %1692 = vst [vmem:[%s2873_s11 + $0xb0] sm:$0xff] %v1660_v21  ;;  %2177 = vrcp.f32 %v1539_v56  ;;  %v1540_v40 = vadd.f32 1.0, %v2164_v35 }
 0x306   : > { %v1661_v20 = vsel %vm1597_vm7, %v2162_v4, %v1629_v54 }
 0x307   : > { %v2166_v7 = vpop.eup %2165  ;;  %1693 = vst [vmem:[%s2873_s11 + $0xb8] sm:$0xff] %v1661_v20  ;;  %2179 = vrcp.f32 %v1540_v40 }
 0x308   : > { %v2168_v55 = vpop.eup %2167  ;;  %v1630_v17 = vmul.f32 %v2166_v7, %v2144_v13 }
 0x309   : > { %v2170_v59 = vpop.eup %2169  ;;  %v1631_v60 = vmul.f32 %v2168_v55, %v2146_v62 }
 0x30a   : > { %v1662_v8 = vsel %vm1598_vm8, %v2166_v7, %v1630_v17  ;;  %v1541_v44 = vadd.f32 1.0, %v2170_v59 }
 0x30b   : > { %v2172_v30 = vpop.eup %2171  ;;  %1694 = vst [vmem:[%s2873_s11 + $0xc0] sm:$0xff] %v1662_v8  ;;  %v1663_v32 = vsel %vm1599_vm9, %v2168_v55, %v1631_v60 }
 0x30c   : > { %1695 = vst [vmem:[%s2873_s11 + $0xc8] sm:$0xff] %v1663_v32  ;;  %v1632_v15 = vmul.f32 %v2172_v30, %v2150_v24  ;;  %2181 = vrcp.f32 %v1541_v44 }
 0x30d   : > { %v2174_v36 = vpop.eup %2173 }
 0x30e   : > { %v1664_v61 = vsel %vm1600_vm10, %v2172_v30, %v1632_v15  ;;  %v1633_v12 = vmul.f32 %v2174_v36, %v2154_v16  ;;  %v2176_v2 = vpop.eup %2175 }
 0x30f   : > { %1696 = vst [vmem:[%s2873_s11 + $0xd0] sm:$0xff] %v1664_v61  ;;  %v1634_v57 = vmul.f32 %v2176_v2, %v2156_v31 }
 0x310   : > { %v1665_v23 = vsel %vm1601_vm11, %v2174_v36, %v1633_v12 }
 0x311   : > { %1697 = vst [vmem:[%s2873_s11 + $0xd8] sm:$0xff] %v1665_v23  ;;  %v1666_v46 = vsel %vm1602_vm12, %v2176_v2, %v1634_v57 }
 0x312   : > { %v2178_v18 = vpop.eup %2177  ;;  %1698 = vst [vmem:[%s2873_s11 + $0xe0] sm:$0xff] %v1666_v46 }
 0x313   : > { %v1635_v38 = vmul.f32 %v2178_v18, %v2160_v28 }
 0x314   : > { %v2180_v1 = vpop.eup %2179 }
 0x315   : > { %v1667_v29 = vsel %vm1603_vm13, %v2178_v18, %v1635_v38  ;;  %v1636_v39 = vmul.f32 %v2180_v1, %v2164_v35 }
 0x316   : > { %1699 = vst [vmem:[%s2873_s11 + $0xe8] sm:$0xff] %v1667_v29 }
 0x317   : > { %v1668_v48 = vsel %vm1604_vm14, %v2180_v1, %v1636_v39 }
 0x318   : > { %1700 = vst [vmem:[%s2873_s11 + $0xf0] sm:$0xff] %v1668_v48 }
 0x319   : > { %v2182_v33 = vpop.eup %2181 }
 0x31a   : > { %v1637_v63 = vmul.f32 %v2182_v33, %v2170_v59 }
 0x31c   : > { %v1669_v41 = vsel %vm1605_vm15, %v2182_v33, %v1637_v63 }
 0x31d   : > { %1701 = vst [vmem:[%s2873_s11 + $0xf8] sm:$0xff] %v1669_v41 }
 0x31e PF: > { %s17_s24 = sadd.s32 1, %s2189_s24  }
 0x31f   : > { %p14_p4 = scmp.ge.s32.totalorder %s17_s24, 4  }
 0x321   :  { %16 = sbr.rel (!%p14_p4) target bundleno = 1 (0x1), region = 78 }

</bundles_post_ra>
